<compile_context>
chip_gen: v5e
topology: v5e:2x2
jax: 0.10.0
libtpu: 0.0.40
codegen_flags: <defaults>
</compile_context>

<pallas_src>
import functools

import jax
import jax.numpy as jnp
from jax.experimental import pallas as pl
from jax.experimental.pallas import tpu as pltpu


def _char_rnn_seq_kernel(x_ref,      # VMEM (T, BB, H)   pre-gathered embeddings (batch block)
                         wih_ref,    # VMEM (H, 4O)      W_ih^T, gate cols [i, f, o, g]
                         whh_ref,    # VMEM (O, 4O)      W_hh^T, gate cols [i, f, o, g]
                         bg_ref,     # VMEM (1, 4O)      b_ih + b_hh, cols [i, f, o, g]
                         wd_ref,     # VMEM (O, V)       decoder weight, transposed
                         bd_ref,     # VMEM (1, V)       decoder bias
                         h0_ref,     # VMEM (BB, O)      initial hidden (this batch block)
                         c0_ref,     # VMEM (BB, O)      initial cell   (this batch block)
                         logp_ref,   # VMEM out (T, BB, V)  per-step log-probs
                         hc_ref,     # VMEM out (BB, 2O)    packed final [h1 | c1]
                         gx_ref,     # VMEM scratch (T*BB, 4O)  precomputed x-path gates
                         hseq_ref):  # VMEM scratch (T*BB, O)   per-step hidden states
    T, BB, H = x_ref.shape
    O = h0_ref.shape[1]
    G = 4 * O
    V = wd_ref.shape[1]

    whh = whh_ref[...]                                   # loop-invariant recurrent weight

    # ---- x-path gate contribution for ALL timesteps in one MXU push (off the
    #      recurrence critical path); bias broadcast hoisted (done once). ----
    x_flat = x_ref[...].reshape(T * BB, H)
    bg_b = jnp.broadcast_to(bg_ref[...], (T * BB, G))
    gx_ref[...] = (
        jnp.dot(x_flat, wih_ref[...], preferred_element_type=jnp.float32) + bg_b
    )

    # Lane mask: first 3*O lanes ([i | f | o]) get sigmoid, last O ([g]) tanh.
    ifo_mask = jax.lax.broadcasted_iota(jnp.int32, (BB, G), 1) < 3 * O

    def step(t, carry):
        h, c = carry                                     # (BB, O) each
        row = pl.multiple_of(t * BB, BB)

        # Recurrent path only: gates = gx[t] + h @ W_hh^T
        gates = gx_ref[pl.ds(row, BB), :] + jnp.dot(
            h, whh, preferred_element_type=jnp.float32)  # (BB, 4O)

        # Full-vreg activations, blended with a precomputed lane mask.
        act = jnp.where(ifo_mask, jax.nn.sigmoid(gates), jnp.tanh(gates))
        i_g = act[:, 0 * O:1 * O]
        f_g = act[:, 1 * O:2 * O]
        o_g = act[:, 2 * O:3 * O]
        g_g = act[:, 3 * O:4 * O]

        c_new = f_g * c + i_g * g_g
        h_new = o_g * jnp.tanh(c_new)

        hseq_ref[pl.ds(row, BB), :] = h_new              # stash for hoisted decoder
        return h_new, c_new

    h_f, c_f = jax.lax.fori_loop(0, T, step, (h0_ref[...], c0_ref[...]),
                                 unroll=True)
    hc_ref[...] = jnp.concatenate([h_f, c_f], axis=1)    # packed (BB, 2O) store

    # ---- Hoisted decoder: one (T*BB, O) @ (O, V) matmul, batched ReLU and
    #      log-softmax over whole vregs, single lane-dense logp write. ----
    hs = hseq_ref[...]                                   # (T*BB, O)
    bd_b = jnp.broadcast_to(bd_ref[...], (T * BB, V))
    y = jnp.dot(hs, wd_ref[...], preferred_element_type=jnp.float32) + bd_b
    y = jnp.maximum(y, 0.0)
    m = jnp.max(y, axis=-1, keepdims=True)
    lse = m + jnp.log(jnp.sum(jnp.exp(y - m), axis=-1, keepdims=True))
    logp_ref[...] = (y - lse).reshape(T, BB, V)


def prepare_fused_params(params):
    """One-time layout plumbing (NOT on the per-call hot path).

    - Reorders the PyTorch gate blocks [i, f, g, o] -> [i, f, o, g] so the
      three sigmoid gates are a contiguous lane prefix inside the kernel.
    - Transposes the input / recurrent gate weights (kept separate so the
      x-path matmul can be hoisted out of the recurrence).
    - Fuses the two LSTM biases and transposes the decoder weight.
    """
    def reorder(w):                                      # axis 0 = 4*O gate rows
        i, f, g, o = jnp.split(w, 4, axis=0)
        return jnp.concatenate([i, f, o, g], axis=0)

    O = params["w_hh"].shape[1]
    w_ih = reorder(params["w_ih"])                       # (4O, H)
    w_hh = reorder(params["w_hh"])                       # (4O, O)
    b_lstm = reorder(params["b_ih"] + params["b_hh"]).reshape(1, 4 * O)
    return {
        "embedding": params["embedding"],                # (V, H)
        "w_ih_t": w_ih.T,                                # (H, 4O)
        "w_hh_t": w_hh.T,                                # (O, 4O)
        "b_gates": b_lstm,                               # (1, 4O)
        "w_dec_t": params["w_dec"].T,                    # (O, V)
        "b_dec": params["b_dec"].reshape(1, -1),         # (1, V)
    }


def char_rnn_forward(fused, input_ids, hidden, *, batch_block=8):
    """Run the CharRNN over a whole id sequence in one Pallas kernel.

    input_ids: (B, T) int32 character indices (T == 1 reproduces a single
               module forward call).
    hidden:    (h0, c0), each (1, B, output_size) float32.
    Returns (log_probs (T, B, V), (h1, c1) each (1, B, output_size)).
    """
    emb = fused["embedding"]
    wih = fused["w_ih_t"]
    whh = fused["w_hh_t"]
    bg = fused["b_gates"]
    wd = fused["w_dec_t"]
    bd = fused["b_dec"]

    V, H = emb.shape
    O = wd.shape[0]
    B, T = input_ids.shape
    BB = min(B, batch_block)
    assert B % BB == 0, "pad B to a multiple of the batch block (mask padded rows)"

    # Pre-gather embeddings outside the kernel (tiny; keeps the in-kernel
    # recurrence chain free of scalar-indexed copies).  (T, B, H) time-major.
    x_seq = emb[input_ids.astype(jnp.int32).T]

    h0, c0 = hidden
    h0_2d = h0.reshape(B, O)
    c0_2d = c0.reshape(B, O)

    out_shape = (
        jax.ShapeDtypeStruct((T, B, V), jnp.float32),    # per-step log-probs
        jax.ShapeDtypeStruct((B, 2 * O), jnp.float32),   # packed [h1 | c1]
    )

    const = lambda n: (lambda b: (0,) * n)               # weights: resident, no re-DMA
    grid_spec = pltpu.PrefetchScalarGridSpec(
        num_scalar_prefetch=0,
        grid=(B // BB,),                                 # batch blocks
        in_specs=[
            pl.BlockSpec((T, BB, H), lambda b: (0, b, 0)),   # pre-gathered embeddings
            pl.BlockSpec((H, 4 * O), const(2)),              # W_ih^T
            pl.BlockSpec((O, 4 * O), const(2)),              # W_hh^T
            pl.BlockSpec((1, 4 * O), const(2)),              # fused gate bias
            pl.BlockSpec((O, V), const(2)),                  # decoder weight^T
            pl.BlockSpec((1, V), const(2)),                  # decoder bias
            pl.BlockSpec((BB, O), lambda b: (b, 0)),         # h0 block
            pl.BlockSpec((BB, O), lambda b: (b, 0)),         # c0 block
        ],
        out_specs=[
            pl.BlockSpec((T, BB, V), lambda b: (0, b, 0)),
            pl.BlockSpec((BB, 2 * O), lambda b: (b, 0)),
        ],
        scratch_shapes=[
            pltpu.VMEM((T * BB, 4 * O), jnp.float32),        # precomputed x-path gates
            pltpu.VMEM((T * BB, O), jnp.float32),            # per-step hidden states
        ],
    )

    logp, hc = pl.pallas_call(
        _char_rnn_seq_kernel,
        out_shape=out_shape,
        grid_spec=grid_spec,
        compiler_params=pltpu.CompilerParams(
            dimension_semantics=("parallel",)),          # batch blocks split across TCs (v7x)
    )(x_seq, wih, whh, bg, wd, bd, h0_2d, c0_2d)

    h1 = hc[:, :O].reshape(1, B, O)
    c1 = hc[:, O:].reshape(1, B, O)
    return logp, (h1, c1)


def _reference_forward(params, input_ids, hidden):
    """Plain-JAX reference (original PyTorch gate order), step-by-step."""
    emb = params["embedding"]
    B, T = input_ids.shape
    O = params["w_hh"].shape[1]
    h = hidden[0].reshape(B, O)
    c = hidden[1].reshape(B, O)
    outs = []
    for t in range(T):
        x = emb[input_ids[:, t]]
        gates = (x @ params["w_ih"].T + h @ params["w_hh"].T
                 + params["b_ih"] + params["b_hh"])
        i_g = jax.nn.sigmoid(gates[:, 0 * O:1 * O])
        f_g = jax.nn.sigmoid(gates[:, 1 * O:2 * O])
        g_g = jnp.tanh(gates[:, 2 * O:3 * O])
        o_g = jax.nn.sigmoid(gates[:, 3 * O:4 * O])
        c = f_g * c + i_g * g_g
        h = o_g * jnp.tanh(c)
        y = jnp.maximum(h @ params["w_dec"].T + params["b_dec"], 0.0)
        outs.append(jax.nn.log_softmax(y, axis=-1))
    return jnp.stack(outs, axis=0), (h, c)


def init_params(key, input_size, hidden_size, output_size):
    ks = jax.random.split(key, 7)
    s = 1.0 / jnp.sqrt(output_size)
    u = lambda k, shape: jax.random.uniform(k, shape, jnp.float32, -s, s)
    return {
        "embedding": jax.random.normal(ks[0], (input_size, hidden_size), jnp.float32),
        "w_ih": u(ks[1], (4 * output_size, hidden_size)),
        "w_hh": u(ks[2], (4 * output_size, output_size)),
        "b_ih": u(ks[3], (4 * output_size,)),
        "b_hh": u(ks[4], (4 * output_size,)),
        "w_dec": u(ks[5], (input_size, output_size)),
        "b_dec": u(ks[6], (input_size,)),
    }


if __name__ == "__main__":
    input_size = 128    # vocab size V (lane-dense)
    hidden_size = 32    # embedding dim H
    output_size = 32    # LSTM hidden dim O
    batch = 16          # two batch blocks of 8 -> grid (2,), engages megacore on v7x
    seq_len = 16        # characters scored per kernel call

    key = jax.random.PRNGKey(0)
    k_param, k_in = jax.random.split(key)
    params = init_params(k_param, input_size, hidden_size, output_size)
    fused = prepare_fused_params(params)   # one-time weight fusion / transpose

    input_ids = jax.random.randint(k_in, (batch, seq_len), 0, input_size, dtype=jnp.int32)
    hidden = (jnp.zeros((1, batch, output_size), jnp.float32),
              jnp.zeros((1, batch, output_size), jnp.float32))

    fwd = jax.jit(functools.partial(char_rnn_forward, fused))
    logp, (h1, c1) = fwd(input_ids, hidden)
    jax.block_until_ready((logp, h1, c1))

    ref_logp, (ref_h, ref_c) = _reference_forward(params, input_ids, hidden)
    assert logp.shape == (seq_len, batch, input_size)
    assert h1.shape == (1, batch, output_size) and c1.shape == (1, batch, output_size)
    assert jnp.allclose(logp, ref_logp, atol=2e-3, rtol=2e-3)
    assert jnp.allclose(h1.reshape(batch, output_size), ref_h, atol=2e-3, rtol=2e-3)
    assert jnp.allclose(c1.reshape(batch, output_size), ref_c, atol=2e-3, rtol=2e-3)

    print("KERNEL_OK")
</pallas_src>

<mosaic_0001>
module attributes {stable_mosaic.version = 11 : i64} {
  func.func @_char_rnn_seq_kernel(%arg0: i32, %arg1: memref<16x8x32xf32, #tpu.memory_space<vmem>>, %arg2: memref<32x128xf32, #tpu.memory_space<vmem>>, %arg3: memref<32x128xf32, #tpu.memory_space<vmem>>, %arg4: memref<1x128xf32, #tpu.memory_space<vmem>>, %arg5: memref<32x128xf32, #tpu.memory_space<vmem>>, %arg6: memref<1x128xf32, #tpu.memory_space<vmem>>, %arg7: memref<8x32xf32, #tpu.memory_space<vmem>>, %arg8: memref<8x32xf32, #tpu.memory_space<vmem>>, %arg9: memref<16x8x128xf32, #tpu.memory_space<vmem>>, %arg10: memref<8x64xf32, #tpu.memory_space<vmem>>, %arg11: memref<128x128xf32, #tpu.memory_space<vmem>>, %arg12: memref<128x32xf32, #tpu.memory_space<vmem>>) attributes {dimension_semantics = [#tpu.dimension_semantics<parallel>], iteration_bounds = array<i64: 2>, scalar_prefetch = 0 : i64, scratch_operands = 2 : i64, tpu.core_type = #tpu.core_type<tc>, window_params = [{transform_indices = @transform_0, window_bounds = array<i64: 16, 8, 32>}, {pipeline_mode = #tpu.pipeline_mode<synchronous>, transform_indices = @transform_1, window_bounds = array<i64: 32, 128>}, {pipeline_mode = #tpu.pipeline_mode<synchronous>, transform_indices = @transform_2, window_bounds = array<i64: 32, 128>}, {pipeline_mode = #tpu.pipeline_mode<synchronous>, transform_indices = @transform_3, window_bounds = array<i64: 1, 128>}, {pipeline_mode = #tpu.pipeline_mode<synchronous>, transform_indices = @transform_4, window_bounds = array<i64: 32, 128>}, {pipeline_mode = #tpu.pipeline_mode<synchronous>, transform_indices = @transform_5, window_bounds = array<i64: 1, 128>}, {transform_indices = @transform_6, window_bounds = array<i64: 8, 32>}, {transform_indices = @transform_7, window_bounds = array<i64: 8, 32>}, {transform_indices = @transform_8, window_bounds = array<i64: 16, 8, 128>}, {transform_indices = @transform_9, window_bounds = array<i64: 8, 64>}]} {
    %c0 = arith.constant 0 : index
    %c0_0 = arith.constant 0 : index
    %0 = vector.load %arg3[%c0, %c0_0] : memref<32x128xf32, #tpu.memory_space<vmem>>, vector<32x128xf32>
    %c0_1 = arith.constant 0 : index
    %c0_2 = arith.constant 0 : index
    %c0_3 = arith.constant 0 : index
    %1 = vector.load %arg1[%c0_1, %c0_2, %c0_3] : memref<16x8x32xf32, #tpu.memory_space<vmem>>, vector<16x8x32xf32>
    %2 = vector.shape_cast %1 : vector<16x8x32xf32> to vector<128x32xf32>
    %c0_4 = arith.constant 0 : index
    %c0_5 = arith.constant 0 : index
    %3 = vector.load %arg4[%c0_4, %c0_5] : memref<1x128xf32, #tpu.memory_space<vmem>>, vector<1x128xf32>
    %4 = vector.shape_cast %3 : vector<1x128xf32> to vector<1x128xf32>
    %5 = vector.broadcast %4 : vector<1x128xf32> to vector<128x128xf32>
    %c0_6 = arith.constant 0 : index
    %c0_7 = arith.constant 0 : index
    %6 = vector.load %arg2[%c0_6, %c0_7] : memref<32x128xf32, #tpu.memory_space<vmem>>, vector<32x128xf32>
    %cst = arith.constant dense<0.000000e+00> : vector<128x128xf32>
    %7 = tpu.matmul %2, %6, %cst {dimension_numbers = #tpu.dot_dimension_numbers<[1], [0], [0], [1], [0, 0, 1, 1], [], []>} : vector<128x32xf32>, vector<32x128xf32>, vector<128x128xf32> -> vector<128x128xf32>
    %8 = arith.addf %7, %5 : vector<128x128xf32>
    %c0_8 = arith.constant 0 : index
    %c0_9 = arith.constant 0 : index
    %9 = vector.load %arg11[%c0_8, %c0_9] : memref<128x128xf32, #tpu.memory_space<vmem>>, vector<128x128xf32>
    tpu.vector_store %arg11[%c0_8, %c0_9], %8 {strides = array<i32>} : memref<128x128xf32, #tpu.memory_space<vmem>>, vector<128x128xf32>,
    %10 = tpu.iota {dimensions = array<i32: 1>} : vector<8x128xi32>
    %c96_i32 = arith.constant 96 : i32
    %11 = vector.broadcast %c96_i32 : i32 to vector<8x128xi32>
    %12 = arith.cmpi slt, %10, %11 : vector<8x128xi32>
    %c0_10 = arith.constant 0 : index
    %c0_11 = arith.constant 0 : index
    %13 = vector.load %arg7[%c0_10, %c0_11] : memref<8x32xf32, #tpu.memory_space<vmem>>, vector<8x32xf32>
    %c0_12 = arith.constant 0 : index
    %c0_13 = arith.constant 0 : index
    %14 = vector.load %arg8[%c0_12, %c0_13] : memref<8x32xf32, #tpu.memory_space<vmem>>, vector<8x32xf32>
    %c0_i32 = arith.constant 0 : i32
    %c8_i32 = arith.constant 8 : i32
    %15 = arith.muli %c0_i32, %c8_i32 : i32
    %16 = tpu.assume_multiple %15, 8 : i32
    %17 = arith.index_cast %16 : i32 to index
    %c0_14 = arith.constant 0 : index
    %18 = vector.load %arg11[%17, %c0_14] : memref<128x128xf32, #tpu.memory_space<vmem>>, vector<8x128xf32>
    %cst_15 = arith.constant dense<0.000000e+00> : vector<8x128xf32>
    %19 = tpu.matmul %13, %0, %cst_15 {dimension_numbers = #tpu.dot_dimension_numbers<[1], [0], [0], [1], [0, 0, 1, 1], [], []>} : vector<8x32xf32>, vector<32x128xf32>, vector<8x128xf32> -> vector<8x128xf32>
    %20 = arith.addf %18, %19 : vector<8x128xf32>
    %21 = arith.negf %20 : vector<8x128xf32>
    %22 = math.exp %21 : vector<8x128xf32>
    %cst_16 = arith.constant 1.000000e+00 : f32
    %23 = vector.broadcast %cst_16 : f32 to vector<8x128xf32>
    %24 = arith.addf %23, %22 : vector<8x128xf32>
    %25 = arith.divf %23, %24 : vector<8x128xf32>
    %26 = math.tanh %20 : vector<8x128xf32>
    %27 = arith.select %12, %25, %26 : vector<8x128xi1>, vector<8x128xf32>
    %28 = vector.extract_strided_slice %27 {offsets = [0, 0], sizes = [8, 32], strides = [1, 1]} : vector<8x128xf32> to vector<8x32xf32>
    %29 = vector.extract_strided_slice %27 {offsets = [0, 32], sizes = [8, 32], strides = [1, 1]} : vector<8x128xf32> to vector<8x32xf32>
    %30 = vector.extract_strided_slice %27 {offsets = [0, 64], sizes = [8, 32], strides = [1, 1]} : vector<8x128xf32> to vector<8x32xf32>
    %31 = vector.extract_strided_slice %27 {offsets = [0, 96], sizes = [8, 32], strides = [1, 1]} : vector<8x128xf32> to vector<8x32xf32>
    %32 = arith.mulf %29, %14 : vector<8x32xf32>
    %33 = arith.mulf %28, %31 : vector<8x32xf32>
    %34 = arith.addf %32, %33 : vector<8x32xf32>
    %35 = math.tanh %34 : vector<8x32xf32>
    %36 = arith.mulf %30, %35 : vector<8x32xf32>
    %37 = arith.index_cast %16 : i32 to index
    %c0_17 = arith.constant 0 : index
    %38 = vector.load %arg12[%37, %c0_17] : memref<128x32xf32, #tpu.memory_space<vmem>>, vector<8x32xf32>
    tpu.vector_store %arg12[%37, %c0_17], %36 {strides = array<i32>} : memref<128x32xf32, #tpu.memory_space<vmem>>, vector<8x32xf32>,
    %c1_i32 = arith.constant 1 : i32
    %c8_i32_18 = arith.constant 8 : i32
    %39 = arith.muli %c1_i32, %c8_i32_18 : i32
    %40 = tpu.assume_multiple %39, 8 : i32
    %41 = arith.index_cast %40 : i32 to index
    %c0_19 = arith.constant 0 : index
    %42 = vector.load %arg11[%41, %c0_19] : memref<128x128xf32, #tpu.memory_space<vmem>>, vector<8x128xf32>
    %cst_20 = arith.constant dense<0.000000e+00> : vector<8x128xf32>
    %43 = tpu.matmul %36, %0, %cst_20 {dimension_numbers = #tpu.dot_dimension_numbers<[1], [0], [0], [1], [0, 0, 1, 1], [], []>} : vector<8x32xf32>, vector<32x128xf32>, vector<8x128xf32> -> vector<8x128xf32>
    %44 = arith.addf %42, %43 : vector<8x128xf32>
    %45 = arith.negf %44 : vector<8x128xf32>
    %46 = math.exp %45 : vector<8x128xf32>
    %cst_21 = arith.constant 1.000000e+00 : f32
    %47 = vector.broadcast %cst_21 : f32 to vector<8x128xf32>
    %48 = arith.addf %47, %46 : vector<8x128xf32>
    %49 = arith.divf %47, %48 : vector<8x128xf32>
    %50 = math.tanh %44 : vector<8x128xf32>
    %51 = arith.select %12, %49, %50 : vector<8x128xi1>, vector<8x128xf32>
    %52 = vector.extract_strided_slice %51 {offsets = [0, 0], sizes = [8, 32], strides = [1, 1]} : vector<8x128xf32> to vector<8x32xf32>
    %53 = vector.extract_strided_slice %51 {offsets = [0, 32], sizes = [8, 32], strides = [1, 1]} : vector<8x128xf32> to vector<8x32xf32>
    %54 = vector.extract_strided_slice %51 {offsets = [0, 64], sizes = [8, 32], strides = [1, 1]} : vector<8x128xf32> to vector<8x32xf32>
    %55 = vector.extract_strided_slice %51 {offsets = [0, 96], sizes = [8, 32], strides = [1, 1]} : vector<8x128xf32> to vector<8x32xf32>
    %56 = arith.mulf %53, %34 : vector<8x32xf32>
    %57 = arith.mulf %52, %55 : vector<8x32xf32>
    %58 = arith.addf %56, %57 : vector<8x32xf32>
    %59 = math.tanh %58 : vector<8x32xf32>
    %60 = arith.mulf %54, %59 : vector<8x32xf32>
    %61 = arith.index_cast %40 : i32 to index
    %c0_22 = arith.constant 0 : index
    %62 = vector.load %arg12[%61, %c0_22] : memref<128x32xf32, #tpu.memory_space<vmem>>, vector<8x32xf32>
    tpu.vector_store %arg12[%61, %c0_22], %60 {strides = array<i32>} : memref<128x32xf32, #tpu.memory_space<vmem>>, vector<8x32xf32>,
    %c2_i32 = arith.constant 2 : i32
    %c8_i32_23 = arith.constant 8 : i32
    %63 = arith.muli %c2_i32, %c8_i32_23 : i32
    %64 = tpu.assume_multiple %63, 8 : i32
    %65 = arith.index_cast %64 : i32 to index
    %c0_24 = arith.constant 0 : index
    %66 = vector.load %arg11[%65, %c0_24] : memref<128x128xf32, #tpu.memory_space<vmem>>, vector<8x128xf32>
    %cst_25 = arith.constant dense<0.000000e+00> : vector<8x128xf32>
    %67 = tpu.matmul %60, %0, %cst_25 {dimension_numbers = #tpu.dot_dimension_numbers<[1], [0], [0], [1], [0, 0, 1, 1], [], []>} : vector<8x32xf32>, vector<32x128xf32>, vector<8x128xf32> -> vector<8x128xf32>
    %68 = arith.addf %66, %67 : vector<8x128xf32>
    %69 = arith.negf %68 : vector<8x128xf32>
    %70 = math.exp %69 : vector<8x128xf32>
    %cst_26 = arith.constant 1.000000e+00 : f32
    %71 = vector.broadcast %cst_26 : f32 to vector<8x128xf32>
    %72 = arith.addf %71, %70 : vector<8x128xf32>
    %73 = arith.divf %71, %72 : vector<8x128xf32>
    %74 = math.tanh %68 : vector<8x128xf32>
    %75 = arith.select %12, %73, %74 : vector<8x128xi1>, vector<8x128xf32>
    %76 = vector.extract_strided_slice %75 {offsets = [0, 0], sizes = [8, 32], strides = [1, 1]} : vector<8x128xf32> to vector<8x32xf32>
    %77 = vector.extract_strided_slice %75 {offsets = [0, 32], sizes = [8, 32], strides = [1, 1]} : vector<8x128xf32> to vector<8x32xf32>
    %78 = vector.extract_strided_slice %75 {offsets = [0, 64], sizes = [8, 32], strides = [1, 1]} : vector<8x128xf32> to vector<8x32xf32>
    %79 = vector.extract_strided_slice %75 {offsets = [0, 96], sizes = [8, 32], strides = [1, 1]} : vector<8x128xf32> to vector<8x32xf32>
    %80 = arith.mulf %77, %58 : vector<8x32xf32>
    %81 = arith.mulf %76, %79 : vector<8x32xf32>
    %82 = arith.addf %80, %81 : vector<8x32xf32>
    %83 = math.tanh %82 : vector<8x32xf32>
    %84 = arith.mulf %78, %83 : vector<8x32xf32>
    %85 = arith.index_cast %64 : i32 to index
    %c0_27 = arith.constant 0 : index
    %86 = vector.load %arg12[%85, %c0_27] : memref<128x32xf32, #tpu.memory_space<vmem>>, vector<8x32xf32>
    tpu.vector_store %arg12[%85, %c0_27], %84 {strides = array<i32>} : memref<128x32xf32, #tpu.memory_space<vmem>>, vector<8x32xf32>,
    %c3_i32 = arith.constant 3 : i32
    %c8_i32_28 = arith.constant 8 : i32
    %87 = arith.muli %c3_i32, %c8_i32_28 : i32
    %88 = tpu.assume_multiple %87, 8 : i32
    %89 = arith.index_cast %88 : i32 to index
    %c0_29 = arith.constant 0 : index
    %90 = vector.load %arg11[%89, %c0_29] : memref<128x128xf32, #tpu.memory_space<vmem>>, vector<8x128xf32>
    %cst_30 = arith.constant dense<0.000000e+00> : vector<8x128xf32>
    %91 = tpu.matmul %84, %0, %cst_30 {dimension_numbers = #tpu.dot_dimension_numbers<[1], [0], [0], [1], [0, 0, 1, 1], [], []>} : vector<8x32xf32>, vector<32x128xf32>, vector<8x128xf32> -> vector<8x128xf32>
    %92 = arith.addf %90, %91 : vector<8x128xf32>
    %93 = arith.negf %92 : vector<8x128xf32>
    %94 = math.exp %93 : vector<8x128xf32>
    %cst_31 = arith.constant 1.000000e+00 : f32
    %95 = vector.broadcast %cst_31 : f32 to vector<8x128xf32>
    %96 = arith.addf %95, %94 : vector<8x128xf32>
    %97 = arith.divf %95, %96 : vector<8x128xf32>
    %98 = math.tanh %92 : vector<8x128xf32>
    %99 = arith.select %12, %97, %98 : vector<8x128xi1>, vector<8x128xf32>
    %100 = vector.extract_strided_slice %99 {offsets = [0, 0], sizes = [8, 32], strides = [1, 1]} : vector<8x128xf32> to vector<8x32xf32>
    %101 = vector.extract_strided_slice %99 {offsets = [0, 32], sizes = [8, 32], strides = [1, 1]} : vector<8x128xf32> to vector<8x32xf32>
    %102 = vector.extract_strided_slice %99 {offsets = [0, 64], sizes = [8, 32], strides = [1, 1]} : vector<8x128xf32> to vector<8x32xf32>
    %103 = vector.extract_strided_slice %99 {offsets = [0, 96], sizes = [8, 32], strides = [1, 1]} : vector<8x128xf32> to vector<8x32xf32>
    %104 = arith.mulf %101, %82 : vector<8x32xf32>
    %105 = arith.mulf %100, %103 : vector<8x32xf32>
    %106 = arith.addf %104, %105 : vector<8x32xf32>
    %107 = math.tanh %106 : vector<8x32xf32>
    %108 = arith.mulf %102, %107 : vector<8x32xf32>
    %109 = arith.index_cast %88 : i32 to index
    %c0_32 = arith.constant 0 : index
    %110 = vector.load %arg12[%109, %c0_32] : memref<128x32xf32, #tpu.memory_space<vmem>>, vector<8x32xf32>
    tpu.vector_store %arg12[%109, %c0_32], %108 {strides = array<i32>} : memref<128x32xf32, #tpu.memory_space<vmem>>, vector<8x32xf32>,
    %c4_i32 = arith.constant 4 : i32
    %c8_i32_33 = arith.constant 8 : i32
    %111 = arith.muli %c4_i32, %c8_i32_33 : i32
    %112 = tpu.assume_multiple %111, 8 : i32
    %113 = arith.index_cast %112 : i32 to index
    %c0_34 = arith.constant 0 : index
    %114 = vector.load %arg11[%113, %c0_34] : memref<128x128xf32, #tpu.memory_space<vmem>>, vector<8x128xf32>
    %cst_35 = arith.constant dense<0.000000e+00> : vector<8x128xf32>
    %115 = tpu.matmul %108, %0, %cst_35 {dimension_numbers = #tpu.dot_dimension_numbers<[1], [0], [0], [1], [0, 0, 1, 1], [], []>} : vector<8x32xf32>, vector<32x128xf32>, vector<8x128xf32> -> vector<8x128xf32>
    %116 = arith.addf %114, %115 : vector<8x128xf32>
    %117 = arith.negf %116 : vector<8x128xf32>
    %118 = math.exp %117 : vector<8x128xf32>
    %cst_36 = arith.constant 1.000000e+00 : f32
    %119 = vector.broadcast %cst_36 : f32 to vector<8x128xf32>
    %120 = arith.addf %119, %118 : vector<8x128xf32>
    %121 = arith.divf %119, %120 : vector<8x128xf32>
    %122 = math.tanh %116 : vector<8x128xf32>
    %123 = arith.select %12, %121, %122 : vector<8x128xi1>, vector<8x128xf32>
    %124 = vector.extract_strided_slice %123 {offsets = [0, 0], sizes = [8, 32], strides = [1, 1]} : vector<8x128xf32> to vector<8x32xf32>
    %125 = vector.extract_strided_slice %123 {offsets = [0, 32], sizes = [8, 32], strides = [1, 1]} : vector<8x128xf32> to vector<8x32xf32>
    %126 = vector.extract_strided_slice %123 {offsets = [0, 64], sizes = [8, 32], strides = [1, 1]} : vector<8x128xf32> to vector<8x32xf32>
    %127 = vector.extract_strided_slice %123 {offsets = [0, 96], sizes = [8, 32], strides = [1, 1]} : vector<8x128xf32> to vector<8x32xf32>
    %128 = arith.mulf %125, %106 : vector<8x32xf32>
    %129 = arith.mulf %124, %127 : vector<8x32xf32>
    %130 = arith.addf %128, %129 : vector<8x32xf32>
    %131 = math.tanh %130 : vector<8x32xf32>
    %132 = arith.mulf %126, %131 : vector<8x32xf32>
    %133 = arith.index_cast %112 : i32 to index
    %c0_37 = arith.constant 0 : index
    %134 = vector.load %arg12[%133, %c0_37] : memref<128x32xf32, #tpu.memory_space<vmem>>, vector<8x32xf32>
    tpu.vector_store %arg12[%133, %c0_37], %132 {strides = array<i32>} : memref<128x32xf32, #tpu.memory_space<vmem>>, vector<8x32xf32>,
    %c5_i32 = arith.constant 5 : i32
    %c8_i32_38 = arith.constant 8 : i32
    %135 = arith.muli %c5_i32, %c8_i32_38 : i32
    %136 = tpu.assume_multiple %135, 8 : i32
    %137 = arith.index_cast %136 : i32 to index
    %c0_39 = arith.constant 0 : index
    %138 = vector.load %arg11[%137, %c0_39] : memref<128x128xf32, #tpu.memory_space<vmem>>, vector<8x128xf32>
    %cst_40 = arith.constant dense<0.000000e+00> : vector<8x128xf32>
    %139 = tpu.matmul %132, %0, %cst_40 {dimension_numbers = #tpu.dot_dimension_numbers<[1], [0], [0], [1], [0, 0, 1, 1], [], []>} : vector<8x32xf32>, vector<32x128xf32>, vector<8x128xf32> -> vector<8x128xf32>
    %140 = arith.addf %138, %139 : vector<8x128xf32>
    %141 = arith.negf %140 : vector<8x128xf32>
    %142 = math.exp %141 : vector<8x128xf32>
    %cst_41 = arith.constant 1.000000e+00 : f32
    %143 = vector.broadcast %cst_41 : f32 to vector<8x128xf32>
    %144 = arith.addf %143, %142 : vector<8x128xf32>
    %145 = arith.divf %143, %144 : vector<8x128xf32>
    %146 = math.tanh %140 : vector<8x128xf32>
    %147 = arith.select %12, %145, %146 : vector<8x128xi1>, vector<8x128xf32>
    %148 = vector.extract_strided_slice %147 {offsets = [0, 0], sizes = [8, 32], strides = [1, 1]} : vector<8x128xf32> to vector<8x32xf32>
    %149 = vector.extract_strided_slice %147 {offsets = [0, 32], sizes = [8, 32], strides = [1, 1]} : vector<8x128xf32> to vector<8x32xf32>
    %150 = vector.extract_strided_slice %147 {offsets = [0, 64], sizes = [8, 32], strides = [1, 1]} : vector<8x128xf32> to vector<8x32xf32>
    %151 = vector.extract_strided_slice %147 {offsets = [0, 96], sizes = [8, 32], strides = [1, 1]} : vector<8x128xf32> to vector<8x32xf32>
    %152 = arith.mulf %149, %130 : vector<8x32xf32>
    %153 = arith.mulf %148, %151 : vector<8x32xf32>
    %154 = arith.addf %152, %153 : vector<8x32xf32>
    %155 = math.tanh %154 : vector<8x32xf32>
    %156 = arith.mulf %150, %155 : vector<8x32xf32>
    %157 = arith.index_cast %136 : i32 to index
    %c0_42 = arith.constant 0 : index
    %158 = vector.load %arg12[%157, %c0_42] : memref<128x32xf32, #tpu.memory_space<vmem>>, vector<8x32xf32>
    tpu.vector_store %arg12[%157, %c0_42], %156 {strides = array<i32>} : memref<128x32xf32, #tpu.memory_space<vmem>>, vector<8x32xf32>,
    %c6_i32 = arith.constant 6 : i32
    %c8_i32_43 = arith.constant 8 : i32
    %159 = arith.muli %c6_i32, %c8_i32_43 : i32
    %160 = tpu.assume_multiple %159, 8 : i32
    %161 = arith.index_cast %160 : i32 to index
    %c0_44 = arith.constant 0 : index
    %162 = vector.load %arg11[%161, %c0_44] : memref<128x128xf32, #tpu.memory_space<vmem>>, vector<8x128xf32>
    %cst_45 = arith.constant dense<0.000000e+00> : vector<8x128xf32>
    %163 = tpu.matmul %156, %0, %cst_45 {dimension_numbers = #tpu.dot_dimension_numbers<[1], [0], [0], [1], [0, 0, 1, 1], [], []>} : vector<8x32xf32>, vector<32x128xf32>, vector<8x128xf32> -> vector<8x128xf32>
    %164 = arith.addf %162, %163 : vector<8x128xf32>
    %165 = arith.negf %164 : vector<8x128xf32>
    %166 = math.exp %165 : vector<8x128xf32>
    %cst_46 = arith.constant 1.000000e+00 : f32
    %167 = vector.broadcast %cst_46 : f32 to vector<8x128xf32>
    %168 = arith.addf %167, %166 : vector<8x128xf32>
    %169 = arith.divf %167, %168 : vector<8x128xf32>
    %170 = math.tanh %164 : vector<8x128xf32>
    %171 = arith.select %12, %169, %170 : vector<8x128xi1>, vector<8x128xf32>
    %172 = vector.extract_strided_slice %171 {offsets = [0, 0], sizes = [8, 32], strides = [1, 1]} : vector<8x128xf32> to vector<8x32xf32>
    %173 = vector.extract_strided_slice %171 {offsets = [0, 32], sizes = [8, 32], strides = [1, 1]} : vector<8x128xf32> to vector<8x32xf32>
    %174 = vector.extract_strided_slice %171 {offsets = [0, 64], sizes = [8, 32], strides = [1, 1]} : vector<8x128xf32> to vector<8x32xf32>
    %175 = vector.extract_strided_slice %171 {offsets = [0, 96], sizes = [8, 32], strides = [1, 1]} : vector<8x128xf32> to vector<8x32xf32>
    %176 = arith.mulf %173, %154 : vector<8x32xf32>
    %177 = arith.mulf %172, %175 : vector<8x32xf32>
    %178 = arith.addf %176, %177 : vector<8x32xf32>
    %179 = math.tanh %178 : vector<8x32xf32>
    %180 = arith.mulf %174, %179 : vector<8x32xf32>
    %181 = arith.index_cast %160 : i32 to index
    %c0_47 = arith.constant 0 : index
    %182 = vector.load %arg12[%181, %c0_47] : memref<128x32xf32, #tpu.memory_space<vmem>>, vector<8x32xf32>
    tpu.vector_store %arg12[%181, %c0_47], %180 {strides = array<i32>} : memref<128x32xf32, #tpu.memory_space<vmem>>, vector<8x32xf32>,
    %c7_i32 = arith.constant 7 : i32
    %c8_i32_48 = arith.constant 8 : i32
    %183 = arith.muli %c7_i32, %c8_i32_48 : i32
    %184 = tpu.assume_multiple %183, 8 : i32
    %185 = arith.index_cast %184 : i32 to index
    %c0_49 = arith.constant 0 : index
    %186 = vector.load %arg11[%185, %c0_49] : memref<128x128xf32, #tpu.memory_space<vmem>>, vector<8x128xf32>
    %cst_50 = arith.constant dense<0.000000e+00> : vector<8x128xf32>
    %187 = tpu.matmul %180, %0, %cst_50 {dimension_numbers = #tpu.dot_dimension_numbers<[1], [0], [0], [1], [0, 0, 1, 1], [], []>} : vector<8x32xf32>, vector<32x128xf32>, vector<8x128xf32> -> vector<8x128xf32>
    %188 = arith.addf %186, %187 : vector<8x128xf32>
    %189 = arith.negf %188 : vector<8x128xf32>
    %190 = math.exp %189 : vector<8x128xf32>
    %cst_51 = arith.constant 1.000000e+00 : f32
    %191 = vector.broadcast %cst_51 : f32 to vector<8x128xf32>
    %192 = arith.addf %191, %190 : vector<8x128xf32>
    %193 = arith.divf %191, %192 : vector<8x128xf32>
    %194 = math.tanh %188 : vector<8x128xf32>
    %195 = arith.select %12, %193, %194 : vector<8x128xi1>, vector<8x128xf32>
    %196 = vector.extract_strided_slice %195 {offsets = [0, 0], sizes = [8, 32], strides = [1, 1]} : vector<8x128xf32> to vector<8x32xf32>
    %197 = vector.extract_strided_slice %195 {offsets = [0, 32], sizes = [8, 32], strides = [1, 1]} : vector<8x128xf32> to vector<8x32xf32>
    %198 = vector.extract_strided_slice %195 {offsets = [0, 64], sizes = [8, 32], strides = [1, 1]} : vector<8x128xf32> to vector<8x32xf32>
    %199 = vector.extract_strided_slice %195 {offsets = [0, 96], sizes = [8, 32], strides = [1, 1]} : vector<8x128xf32> to vector<8x32xf32>
    %200 = arith.mulf %197, %178 : vector<8x32xf32>
    %201 = arith.mulf %196, %199 : vector<8x32xf32>
    %202 = arith.addf %200, %201 : vector<8x32xf32>
    %203 = math.tanh %202 : vector<8x32xf32>
    %204 = arith.mulf %198, %203 : vector<8x32xf32>
    %205 = arith.index_cast %184 : i32 to index
    %c0_52 = arith.constant 0 : index
    %206 = vector.load %arg12[%205, %c0_52] : memref<128x32xf32, #tpu.memory_space<vmem>>, vector<8x32xf32>
    tpu.vector_store %arg12[%205, %c0_52], %204 {strides = array<i32>} : memref<128x32xf32, #tpu.memory_space<vmem>>, vector<8x32xf32>,
    %c8_i32_53 = arith.constant 8 : i32
    %c8_i32_54 = arith.constant 8 : i32
    %207 = arith.muli %c8_i32_53, %c8_i32_54 : i32
    %208 = tpu.assume_multiple %207, 8 : i32
    %209 = arith.index_cast %208 : i32 to index
    %c0_55 = arith.constant 0 : index
    %210 = vector.load %arg11[%209, %c0_55] : memref<128x128xf32, #tpu.memory_space<vmem>>, vector<8x128xf32>
    %cst_56 = arith.constant dense<0.000000e+00> : vector<8x128xf32>
    %211 = tpu.matmul %204, %0, %cst_56 {dimension_numbers = #tpu.dot_dimension_numbers<[1], [0], [0], [1], [0, 0, 1, 1], [], []>} : vector<8x32xf32>, vector<32x128xf32>, vector<8x128xf32> -> vector<8x128xf32>
    %212 = arith.addf %210, %211 : vector<8x128xf32>
    %213 = arith.negf %212 : vector<8x128xf32>
    %214 = math.exp %213 : vector<8x128xf32>
    %cst_57 = arith.constant 1.000000e+00 : f32
    %215 = vector.broadcast %cst_57 : f32 to vector<8x128xf32>
    %216 = arith.addf %215, %214 : vector<8x128xf32>
    %217 = arith.divf %215, %216 : vector<8x128xf32>
    %218 = math.tanh %212 : vector<8x128xf32>
    %219 = arith.select %12, %217, %218 : vector<8x128xi1>, vector<8x128xf32>
    %220 = vector.extract_strided_slice %219 {offsets = [0, 0], sizes = [8, 32], strides = [1, 1]} : vector<8x128xf32> to vector<8x32xf32>
    %221 = vector.extract_strided_slice %219 {offsets = [0, 32], sizes = [8, 32], strides = [1, 1]} : vector<8x128xf32> to vector<8x32xf32>
    %222 = vector.extract_strided_slice %219 {offsets = [0, 64], sizes = [8, 32], strides = [1, 1]} : vector<8x128xf32> to vector<8x32xf32>
    %223 = vector.extract_strided_slice %219 {offsets = [0, 96], sizes = [8, 32], strides = [1, 1]} : vector<8x128xf32> to vector<8x32xf32>
    %224 = arith.mulf %221, %202 : vector<8x32xf32>
    %225 = arith.mulf %220, %223 : vector<8x32xf32>
    %226 = arith.addf %224, %225 : vector<8x32xf32>
    %227 = math.tanh %226 : vector<8x32xf32>
    %228 = arith.mulf %222, %227 : vector<8x32xf32>
    %229 = arith.index_cast %208 : i32 to index
    %c0_58 = arith.constant 0 : index
    %230 = vector.load %arg12[%229, %c0_58] : memref<128x32xf32, #tpu.memory_space<vmem>>, vector<8x32xf32>
    tpu.vector_store %arg12[%229, %c0_58], %228 {strides = array<i32>} : memref<128x32xf32, #tpu.memory_space<vmem>>, vector<8x32xf32>,
    %c9_i32 = arith.constant 9 : i32
    %c8_i32_59 = arith.constant 8 : i32
    %231 = arith.muli %c9_i32, %c8_i32_59 : i32
    %232 = tpu.assume_multiple %231, 8 : i32
    %233 = arith.index_cast %232 : i32 to index
    %c0_60 = arith.constant 0 : index
    %234 = vector.load %arg11[%233, %c0_60] : memref<128x128xf32, #tpu.memory_space<vmem>>, vector<8x128xf32>
    %cst_61 = arith.constant dense<0.000000e+00> : vector<8x128xf32>
    %235 = tpu.matmul %228, %0, %cst_61 {dimension_numbers = #tpu.dot_dimension_numbers<[1], [0], [0], [1], [0, 0, 1, 1], [], []>} : vector<8x32xf32>, vector<32x128xf32>, vector<8x128xf32> -> vector<8x128xf32>
    %236 = arith.addf %234, %235 : vector<8x128xf32>
    %237 = arith.negf %236 : vector<8x128xf32>
    %238 = math.exp %237 : vector<8x128xf32>
    %cst_62 = arith.constant 1.000000e+00 : f32
    %239 = vector.broadcast %cst_62 : f32 to vector<8x128xf32>
    %240 = arith.addf %239, %238 : vector<8x128xf32>
    %241 = arith.divf %239, %240 : vector<8x128xf32>
    %242 = math.tanh %236 : vector<8x128xf32>
    %243 = arith.select %12, %241, %242 : vector<8x128xi1>, vector<8x128xf32>
    %244 = vector.extract_strided_slice %243 {offsets = [0, 0], sizes = [8, 32], strides = [1, 1]} : vector<8x128xf32> to vector<8x32xf32>
    %245 = vector.extract_strided_slice %243 {offsets = [0, 32], sizes = [8, 32], strides = [1, 1]} : vector<8x128xf32> to vector<8x32xf32>
    %246 = vector.extract_strided_slice %243 {offsets = [0, 64], sizes = [8, 32], strides = [1, 1]} : vector<8x128xf32> to vector<8x32xf32>
    %247 = vector.extract_strided_slice %243 {offsets = [0, 96], sizes = [8, 32], strides = [1, 1]} : vector<8x128xf32> to vector<8x32xf32>
    %248 = arith.mulf %245, %226 : vector<8x32xf32>
    %249 = arith.mulf %244, %247 : vector<8x32xf32>
    %250 = arith.addf %248, %249 : vector<8x32xf32>
    %251 = math.tanh %250 : vector<8x32xf32>
    %252 = arith.mulf %246, %251 : vector<8x32xf32>
    %253 = arith.index_cast %232 : i32 to index
    %c0_63 = arith.constant 0 : index
    %254 = vector.load %arg12[%253, %c0_63] : memref<128x32xf32, #tpu.memory_space<vmem>>, vector<8x32xf32>
    tpu.vector_store %arg12[%253, %c0_63], %252 {strides = array<i32>} : memref<128x32xf32, #tpu.memory_space<vmem>>, vector<8x32xf32>,
    %c10_i32 = arith.constant 10 : i32
    %c8_i32_64 = arith.constant 8 : i32
    %255 = arith.muli %c10_i32, %c8_i32_64 : i32
    %256 = tpu.assume_multiple %255, 8 : i32
    %257 = arith.index_cast %256 : i32 to index
    %c0_65 = arith.constant 0 : index
    %258 = vector.load %arg11[%257, %c0_65] : memref<128x128xf32, #tpu.memory_space<vmem>>, vector<8x128xf32>
    %cst_66 = arith.constant dense<0.000000e+00> : vector<8x128xf32>
    %259 = tpu.matmul %252, %0, %cst_66 {dimension_numbers = #tpu.dot_dimension_numbers<[1], [0], [0], [1], [0, 0, 1, 1], [], []>} : vector<8x32xf32>, vector<32x128xf32>, vector<8x128xf32> -> vector<8x128xf32>
    %260 = arith.addf %258, %259 : vector<8x128xf32>
    %261 = arith.negf %260 : vector<8x128xf32>
    %262 = math.exp %261 : vector<8x128xf32>
    %cst_67 = arith.constant 1.000000e+00 : f32
    %263 = vector.broadcast %cst_67 : f32 to vector<8x128xf32>
    %264 = arith.addf %263, %262 : vector<8x128xf32>
    %265 = arith.divf %263, %264 : vector<8x128xf32>
    %266 = math.tanh %260 : vector<8x128xf32>
    %267 = arith.select %12, %265, %266 : vector<8x128xi1>, vector<8x128xf32>
    %268 = vector.extract_strided_slice %267 {offsets = [0, 0], sizes = [8, 32], strides = [1, 1]} : vector<8x128xf32> to vector<8x32xf32>
    %269 = vector.extract_strided_slice %267 {offsets = [0, 32], sizes = [8, 32], strides = [1, 1]} : vector<8x128xf32> to vector<8x32xf32>
    %270 = vector.extract_strided_slice %267 {offsets = [0, 64], sizes = [8, 32], strides = [1, 1]} : vector<8x128xf32> to vector<8x32xf32>
    %271 = vector.extract_strided_slice %267 {offsets = [0, 96], sizes = [8, 32], strides = [1, 1]} : vector<8x128xf32> to vector<8x32xf32>
    %272 = arith.mulf %269, %250 : vector<8x32xf32>
    %273 = arith.mulf %268, %271 : vector<8x32xf32>
    %274 = arith.addf %272, %273 : vector<8x32xf32>
    %275 = math.tanh %274 : vector<8x32xf32>
    %276 = arith.mulf %270, %275 : vector<8x32xf32>
    %277 = arith.index_cast %256 : i32 to index
    %c0_68 = arith.constant 0 : index
    %278 = vector.load %arg12[%277, %c0_68] : memref<128x32xf32, #tpu.memory_space<vmem>>, vector<8x32xf32>
    tpu.vector_store %arg12[%277, %c0_68], %276 {strides = array<i32>} : memref<128x32xf32, #tpu.memory_space<vmem>>, vector<8x32xf32>,
    %c11_i32 = arith.constant 11 : i32
    %c8_i32_69 = arith.constant 8 : i32
    %279 = arith.muli %c11_i32, %c8_i32_69 : i32
    %280 = tpu.assume_multiple %279, 8 : i32
    %281 = arith.index_cast %280 : i32 to index
    %c0_70 = arith.constant 0 : index
    %282 = vector.load %arg11[%281, %c0_70] : memref<128x128xf32, #tpu.memory_space<vmem>>, vector<8x128xf32>
    %cst_71 = arith.constant dense<0.000000e+00> : vector<8x128xf32>
    %283 = tpu.matmul %276, %0, %cst_71 {dimension_numbers = #tpu.dot_dimension_numbers<[1], [0], [0], [1], [0, 0, 1, 1], [], []>} : vector<8x32xf32>, vector<32x128xf32>, vector<8x128xf32> -> vector<8x128xf32>
    %284 = arith.addf %282, %283 : vector<8x128xf32>
    %285 = arith.negf %284 : vector<8x128xf32>
    %286 = math.exp %285 : vector<8x128xf32>
    %cst_72 = arith.constant 1.000000e+00 : f32
    %287 = vector.broadcast %cst_72 : f32 to vector<8x128xf32>
    %288 = arith.addf %287, %286 : vector<8x128xf32>
    %289 = arith.divf %287, %288 : vector<8x128xf32>
    %290 = math.tanh %284 : vector<8x128xf32>
    %291 = arith.select %12, %289, %290 : vector<8x128xi1>, vector<8x128xf32>
    %292 = vector.extract_strided_slice %291 {offsets = [0, 0], sizes = [8, 32], strides = [1, 1]} : vector<8x128xf32> to vector<8x32xf32>
    %293 = vector.extract_strided_slice %291 {offsets = [0, 32], sizes = [8, 32], strides = [1, 1]} : vector<8x128xf32> to vector<8x32xf32>
    %294 = vector.extract_strided_slice %291 {offsets = [0, 64], sizes = [8, 32], strides = [1, 1]} : vector<8x128xf32> to vector<8x32xf32>
    %295 = vector.extract_strided_slice %291 {offsets = [0, 96], sizes = [8, 32], strides = [1, 1]} : vector<8x128xf32> to vector<8x32xf32>
    %296 = arith.mulf %293, %274 : vector<8x32xf32>
    %297 = arith.mulf %292, %295 : vector<8x32xf32>
    %298 = arith.addf %296, %297 : vector<8x32xf32>
    %299 = math.tanh %298 : vector<8x32xf32>
    %300 = arith.mulf %294, %299 : vector<8x32xf32>
    %301 = arith.index_cast %280 : i32 to index
    %c0_73 = arith.constant 0 : index
    %302 = vector.load %arg12[%301, %c0_73] : memref<128x32xf32, #tpu.memory_space<vmem>>, vector<8x32xf32>
    tpu.vector_store %arg12[%301, %c0_73], %300 {strides = array<i32>} : memref<128x32xf32, #tpu.memory_space<vmem>>, vector<8x32xf32>,
    %c12_i32 = arith.constant 12 : i32
    %c8_i32_74 = arith.constant 8 : i32
    %303 = arith.muli %c12_i32, %c8_i32_74 : i32
    %304 = tpu.assume_multiple %303, 8 : i32
    %305 = arith.index_cast %304 : i32 to index
    %c0_75 = arith.constant 0 : index
    %306 = vector.load %arg11[%305, %c0_75] : memref<128x128xf32, #tpu.memory_space<vmem>>, vector<8x128xf32>
    %cst_76 = arith.constant dense<0.000000e+00> : vector<8x128xf32>
    %307 = tpu.matmul %300, %0, %cst_76 {dimension_numbers = #tpu.dot_dimension_numbers<[1], [0], [0], [1], [0, 0, 1, 1], [], []>} : vector<8x32xf32>, vector<32x128xf32>, vector<8x128xf32> -> vector<8x128xf32>
    %308 = arith.addf %306, %307 : vector<8x128xf32>
    %309 = arith.negf %308 : vector<8x128xf32>
    %310 = math.exp %309 : vector<8x128xf32>
    %cst_77 = arith.constant 1.000000e+00 : f32
    %311 = vector.broadcast %cst_77 : f32 to vector<8x128xf32>
    %312 = arith.addf %311, %310 : vector<8x128xf32>
    %313 = arith.divf %311, %312 : vector<8x128xf32>
    %314 = math.tanh %308 : vector<8x128xf32>
    %315 = arith.select %12, %313, %314 : vector<8x128xi1>, vector<8x128xf32>
    %316 = vector.extract_strided_slice %315 {offsets = [0, 0], sizes = [8, 32], strides = [1, 1]} : vector<8x128xf32> to vector<8x32xf32>
    %317 = vector.extract_strided_slice %315 {offsets = [0, 32], sizes = [8, 32], strides = [1, 1]} : vector<8x128xf32> to vector<8x32xf32>
    %318 = vector.extract_strided_slice %315 {offsets = [0, 64], sizes = [8, 32], strides = [1, 1]} : vector<8x128xf32> to vector<8x32xf32>
    %319 = vector.extract_strided_slice %315 {offsets = [0, 96], sizes = [8, 32], strides = [1, 1]} : vector<8x128xf32> to vector<8x32xf32>
    %320 = arith.mulf %317, %298 : vector<8x32xf32>
    %321 = arith.mulf %316, %319 : vector<8x32xf32>
    %322 = arith.addf %320, %321 : vector<8x32xf32>
    %323 = math.tanh %322 : vector<8x32xf32>
    %324 = arith.mulf %318, %323 : vector<8x32xf32>
    %325 = arith.index_cast %304 : i32 to index
    %c0_78 = arith.constant 0 : index
    %326 = vector.load %arg12[%325, %c0_78] : memref<128x32xf32, #tpu.memory_space<vmem>>, vector<8x32xf32>
    tpu.vector_store %arg12[%325, %c0_78], %324 {strides = array<i32>} : memref<128x32xf32, #tpu.memory_space<vmem>>, vector<8x32xf32>,
    %c13_i32 = arith.constant 13 : i32
    %c8_i32_79 = arith.constant 8 : i32
    %327 = arith.muli %c13_i32, %c8_i32_79 : i32
    %328 = tpu.assume_multiple %327, 8 : i32
    %329 = arith.index_cast %328 : i32 to index
    %c0_80 = arith.constant 0 : index
    %330 = vector.load %arg11[%329, %c0_80] : memref<128x128xf32, #tpu.memory_space<vmem>>, vector<8x128xf32>
    %cst_81 = arith.constant dense<0.000000e+00> : vector<8x128xf32>
    %331 = tpu.matmul %324, %0, %cst_81 {dimension_numbers = #tpu.dot_dimension_numbers<[1], [0], [0], [1], [0, 0, 1, 1], [], []>} : vector<8x32xf32>, vector<32x128xf32>, vector<8x128xf32> -> vector<8x128xf32>
    %332 = arith.addf %330, %331 : vector<8x128xf32>
    %333 = arith.negf %332 : vector<8x128xf32>
    %334 = math.exp %333 : vector<8x128xf32>
    %cst_82 = arith.constant 1.000000e+00 : f32
    %335 = vector.broadcast %cst_82 : f32 to vector<8x128xf32>
    %336 = arith.addf %335, %334 : vector<8x128xf32>
    %337 = arith.divf %335, %336 : vector<8x128xf32>
    %338 = math.tanh %332 : vector<8x128xf32>
    %339 = arith.select %12, %337, %338 : vector<8x128xi1>, vector<8x128xf32>
    %340 = vector.extract_strided_slice %339 {offsets = [0, 0], sizes = [8, 32], strides = [1, 1]} : vector<8x128xf32> to vector<8x32xf32>
    %341 = vector.extract_strided_slice %339 {offsets = [0, 32], sizes = [8, 32], strides = [1, 1]} : vector<8x128xf32> to vector<8x32xf32>
    %342 = vector.extract_strided_slice %339 {offsets = [0, 64], sizes = [8, 32], strides = [1, 1]} : vector<8x128xf32> to vector<8x32xf32>
    %343 = vector.extract_strided_slice %339 {offsets = [0, 96], sizes = [8, 32], strides = [1, 1]} : vector<8x128xf32> to vector<8x32xf32>
    %344 = arith.mulf %341, %322 : vector<8x32xf32>
    %345 = arith.mulf %340, %343 : vector<8x32xf32>
    %346 = arith.addf %344, %345 : vector<8x32xf32>
    %347 = math.tanh %346 : vector<8x32xf32>
    %348 = arith.mulf %342, %347 : vector<8x32xf32>
    %349 = arith.index_cast %328 : i32 to index
    %c0_83 = arith.constant 0 : index
    %350 = vector.load %arg12[%349, %c0_83] : memref<128x32xf32, #tpu.memory_space<vmem>>, vector<8x32xf32>
    tpu.vector_store %arg12[%349, %c0_83], %348 {strides = array<i32>} : memref<128x32xf32, #tpu.memory_space<vmem>>, vector<8x32xf32>,
    %c14_i32 = arith.constant 14 : i32
    %c8_i32_84 = arith.constant 8 : i32
    %351 = arith.muli %c14_i32, %c8_i32_84 : i32
    %352 = tpu.assume_multiple %351, 8 : i32
    %353 = arith.index_cast %352 : i32 to index
    %c0_85 = arith.constant 0 : index
    %354 = vector.load %arg11[%353, %c0_85] : memref<128x128xf32, #tpu.memory_space<vmem>>, vector<8x128xf32>
    %cst_86 = arith.constant dense<0.000000e+00> : vector<8x128xf32>
    %355 = tpu.matmul %348, %0, %cst_86 {dimension_numbers = #tpu.dot_dimension_numbers<[1], [0], [0], [1], [0, 0, 1, 1], [], []>} : vector<8x32xf32>, vector<32x128xf32>, vector<8x128xf32> -> vector<8x128xf32>
    %356 = arith.addf %354, %355 : vector<8x128xf32>
    %357 = arith.negf %356 : vector<8x128xf32>
    %358 = math.exp %357 : vector<8x128xf32>
    %cst_87 = arith.constant 1.000000e+00 : f32
    %359 = vector.broadcast %cst_87 : f32 to vector<8x128xf32>
    %360 = arith.addf %359, %358 : vector<8x128xf32>
    %361 = arith.divf %359, %360 : vector<8x128xf32>
    %362 = math.tanh %356 : vector<8x128xf32>
    %363 = arith.select %12, %361, %362 : vector<8x128xi1>, vector<8x128xf32>
    %364 = vector.extract_strided_slice %363 {offsets = [0, 0], sizes = [8, 32], strides = [1, 1]} : vector<8x128xf32> to vector<8x32xf32>
    %365 = vector.extract_strided_slice %363 {offsets = [0, 32], sizes = [8, 32], strides = [1, 1]} : vector<8x128xf32> to vector<8x32xf32>
    %366 = vector.extract_strided_slice %363 {offsets = [0, 64], sizes = [8, 32], strides = [1, 1]} : vector<8x128xf32> to vector<8x32xf32>
    %367 = vector.extract_strided_slice %363 {offsets = [0, 96], sizes = [8, 32], strides = [1, 1]} : vector<8x128xf32> to vector<8x32xf32>
    %368 = arith.mulf %365, %346 : vector<8x32xf32>
    %369 = arith.mulf %364, %367 : vector<8x32xf32>
    %370 = arith.addf %368, %369 : vector<8x32xf32>
    %371 = math.tanh %370 : vector<8x32xf32>
    %372 = arith.mulf %366, %371 : vector<8x32xf32>
    %373 = arith.index_cast %352 : i32 to index
    %c0_88 = arith.constant 0 : index
    %374 = vector.load %arg12[%373, %c0_88] : memref<128x32xf32, #tpu.memory_space<vmem>>, vector<8x32xf32>
    tpu.vector_store %arg12[%373, %c0_88], %372 {strides = array<i32>} : memref<128x32xf32, #tpu.memory_space<vmem>>, vector<8x32xf32>,
    %c15_i32 = arith.constant 15 : i32
    %c8_i32_89 = arith.constant 8 : i32
    %375 = arith.muli %c15_i32, %c8_i32_89 : i32
    %376 = tpu.assume_multiple %375, 8 : i32
    %377 = arith.index_cast %376 : i32 to index
    %c0_90 = arith.constant 0 : index
    %378 = vector.load %arg11[%377, %c0_90] : memref<128x128xf32, #tpu.memory_space<vmem>>, vector<8x128xf32>
    %cst_91 = arith.constant dense<0.000000e+00> : vector<8x128xf32>
    %379 = tpu.matmul %372, %0, %cst_91 {dimension_numbers = #tpu.dot_dimension_numbers<[1], [0], [0], [1], [0, 0, 1, 1], [], []>} : vector<8x32xf32>, vector<32x128xf32>, vector<8x128xf32> -> vector<8x128xf32>
    %380 = arith.addf %378, %379 : vector<8x128xf32>
    %381 = arith.negf %380 : vector<8x128xf32>
    %382 = math.exp %381 : vector<8x128xf32>
    %cst_92 = arith.constant 1.000000e+00 : f32
    %383 = vector.broadcast %cst_92 : f32 to vector<8x128xf32>
    %384 = arith.addf %383, %382 : vector<8x128xf32>
    %385 = arith.divf %383, %384 : vector<8x128xf32>
    %386 = math.tanh %380 : vector<8x128xf32>
    %387 = arith.select %12, %385, %386 : vector<8x128xi1>, vector<8x128xf32>
    %388 = vector.extract_strided_slice %387 {offsets = [0, 0], sizes = [8, 32], strides = [1, 1]} : vector<8x128xf32> to vector<8x32xf32>
    %389 = vector.extract_strided_slice %387 {offsets = [0, 32], sizes = [8, 32], strides = [1, 1]} : vector<8x128xf32> to vector<8x32xf32>
    %390 = vector.extract_strided_slice %387 {offsets = [0, 64], sizes = [8, 32], strides = [1, 1]} : vector<8x128xf32> to vector<8x32xf32>
    %391 = vector.extract_strided_slice %387 {offsets = [0, 96], sizes = [8, 32], strides = [1, 1]} : vector<8x128xf32> to vector<8x32xf32>
    %392 = arith.mulf %389, %370 : vector<8x32xf32>
    %393 = arith.mulf %388, %391 : vector<8x32xf32>
    %394 = arith.addf %392, %393 : vector<8x32xf32>
    %395 = math.tanh %394 : vector<8x32xf32>
    %396 = arith.mulf %390, %395 : vector<8x32xf32>
    %397 = arith.index_cast %376 : i32 to index
    %c0_93 = arith.constant 0 : index
    %398 = vector.load %arg12[%397, %c0_93] : memref<128x32xf32, #tpu.memory_space<vmem>>, vector<8x32xf32>
    tpu.vector_store %arg12[%397, %c0_93], %396 {strides = array<i32>} : memref<128x32xf32, #tpu.memory_space<vmem>>, vector<8x32xf32>,
    %c16_i32 = arith.constant 16 : i32
    %399 = tpu.concatenate %396, %394 in 1 : vector<8x32xf32>, vector<8x32xf32> -> vector<8x64xf32>
    %c0_94 = arith.constant 0 : index
    %c0_95 = arith.constant 0 : index
    %400 = vector.load %arg10[%c0_94, %c0_95] : memref<8x64xf32, #tpu.memory_space<vmem>>, vector<8x64xf32>
    tpu.vector_store %arg10[%c0_94, %c0_95], %399 {strides = array<i32>} : memref<8x64xf32, #tpu.memory_space<vmem>>, vector<8x64xf32>,
    %c0_96 = arith.constant 0 : index
    %c0_97 = arith.constant 0 : index
    %401 = vector.load %arg12[%c0_96, %c0_97] : memref<128x32xf32, #tpu.memory_space<vmem>>, vector<128x32xf32>
    %c0_98 = arith.constant 0 : index
    %c0_99 = arith.constant 0 : index
    %402 = vector.load %arg6[%c0_98, %c0_99] : memref<1x128xf32, #tpu.memory_space<vmem>>, vector<1x128xf32>
    %403 = vector.shape_cast %402 : vector<1x128xf32> to vector<1x128xf32>
    %404 = vector.broadcast %403 : vector<1x128xf32> to vector<128x128xf32>
    %c0_100 = arith.constant 0 : index
    %c0_101 = arith.constant 0 : index
    %405 = vector.load %arg5[%c0_100, %c0_101] : memref<32x128xf32, #tpu.memory_space<vmem>>, vector<32x128xf32>
    %cst_102 = arith.constant dense<0.000000e+00> : vector<128x128xf32>
    %406 = tpu.matmul %401, %405, %cst_102 {dimension_numbers = #tpu.dot_dimension_numbers<[1], [0], [0], [1], [0, 0, 1, 1], [], []>} : vector<128x32xf32>, vector<32x128xf32>, vector<128x128xf32> -> vector<128x128xf32>
    %407 = arith.addf %406, %404 : vector<128x128xf32>
    %cst_103 = arith.constant 0.000000e+00 : f32
    %408 = vector.broadcast %cst_103 : f32 to vector<128x128xf32>
    %409 = arith.maximumf %407, %408 : vector<128x128xf32>
    %cst_104 = arith.constant dense<0xFF800000> : vector<128xf32>
    %410 = vector.multi_reduction <maximumf>, %409, %cst_104 [1] : vector<128x128xf32> to vector<128xf32>
    %411 = vector.shape_cast %410 : vector<128xf32> to vector<128x1xf32>
    %412 = vector.broadcast %411 : vector<128x1xf32> to vector<128x128xf32>
    %413 = arith.subf %409, %412 : vector<128x128xf32>
    %414 = math.exp %413 : vector<128x128xf32>
    %cst_105 = arith.constant dense<0.000000e+00> : vector<128xf32>
    %415 = vector.multi_reduction <add>, %414, %cst_105 [1] : vector<128x128xf32> to vector<128xf32>
    %416 = vector.shape_cast %415 : vector<128xf32> to vector<128x1xf32>
    %417 = math.log %416 : vector<128x1xf32>
    %418 = arith.addf %411, %417 : vector<128x1xf32>
    %419 = vector.broadcast %418 : vector<128x1xf32> to vector<128x128xf32>
    %420 = arith.subf %409, %419 : vector<128x128xf32>
    %421 = vector.shape_cast %420 : vector<128x128xf32> to vector<16x8x128xf32>
    %c0_106 = arith.constant 0 : index
    %c0_107 = arith.constant 0 : index
    %c0_108 = arith.constant 0 : index
    %422 = vector.load %arg9[%c0_106, %c0_107, %c0_108] : memref<16x8x128xf32, #tpu.memory_space<vmem>>, vector<16x8x128xf32>
    tpu.vector_store %arg9[%c0_106, %c0_107, %c0_108], %421 {strides = array<i32>} : memref<16x8x128xf32, #tpu.memory_space<vmem>>, vector<16x8x128xf32>,
    return
  }
  func.func @transform_0(%arg0: i32) -> (i32, i32, i32) {
    %c0_i32 = arith.constant 0 : i32
    %c0_i32_0 = arith.constant 0 : i32
    %c0_i32_1 = arith.constant 0 : i32
    return %c0_i32, %arg0, %c0_i32_0 : i32, i32, i32
  }
  func.func @transform_1(%arg0: i32) -> (i32, i32) {
    %c0_i32 = arith.constant 0 : i32
    %c0_i32_0 = arith.constant 0 : i32
    %c0_i32_1 = arith.constant 0 : i32
    return %c0_i32, %c0_i32_0 : i32, i32
  }
  func.func @transform_2(%arg0: i32) -> (i32, i32) {
    %c0_i32 = arith.constant 0 : i32
    %c0_i32_0 = arith.constant 0 : i32
    %c0_i32_1 = arith.constant 0 : i32
    return %c0_i32, %c0_i32_0 : i32, i32
  }
  func.func @transform_3(%arg0: i32) -> (i32, i32) {
    %c0_i32 = arith.constant 0 : i32
    %c0_i32_0 = arith.constant 0 : i32
    %c0_i32_1 = arith.constant 0 : i32
    return %c0_i32, %c0_i32_0 : i32, i32
  }
  func.func @transform_4(%arg0: i32) -> (i32, i32) {
    %c0_i32 = arith.constant 0 : i32
    %c0_i32_0 = arith.constant 0 : i32
    %c0_i32_1 = arith.constant 0 : i32
    return %c0_i32, %c0_i32_0 : i32, i32
  }
  func.func @transform_5(%arg0: i32) -> (i32, i32) {
    %c0_i32 = arith.constant 0 : i32
    %c0_i32_0 = arith.constant 0 : i32
    %c0_i32_1 = arith.constant 0 : i32
    return %c0_i32, %c0_i32_0 : i32, i32
  }
  func.func @transform_6(%arg0: i32) -> (i32, i32) {
    %c0_i32 = arith.constant 0 : i32
    %c0_i32_0 = arith.constant 0 : i32
    return %arg0, %c0_i32 : i32, i32
  }
  func.func @transform_7(%arg0: i32) -> (i32, i32) {
    %c0_i32 = arith.constant 0 : i32
    %c0_i32_0 = arith.constant 0 : i32
    return %arg0, %c0_i32 : i32, i32
  }
  func.func @transform_8(%arg0: i32) -> (i32, i32, i32) {
    %c0_i32 = arith.constant 0 : i32
    %c0_i32_0 = arith.constant 0 : i32
    %c0_i32_1 = arith.constant 0 : i32
    return %c0_i32, %arg0, %c0_i32_0 : i32, i32, i32
  }
  func.func @transform_9(%arg0: i32) -> (i32, i32) {
    %c0_i32 = arith.constant 0 : i32
    %c0_i32_0 = arith.constant 0 : i32
    return %arg0, %c0_i32 : i32, i32
  }
}

</mosaic_0001>

<bundles_post_ra>
// kernel: char_rnn_forward.1
= control target key start
LH: loop header
LB: loop body
LE: loop exit
PB: predicated region body
PF: predicated region fallthrough
CT: control target
= control target key end

     0   :  { %15 = vsyncpa [#allocation6], 0  ;;  %s3347_s0 = inlined_call_operand.vmem [shape: f32[16,16,32], index: 0, kind: input, shape index: {}]   ;;  %s3348_s1 = inlined_call_operand.vmem [shape: f32[32,128], index: 1, kind: input, shape index: {}]   ;;  %s3349_s2 = inlined_call_operand.vmem [shape: f32[32,128], index: 2, kind: input, shape index: {}]   ;;  %s3350_s3 = inlined_call_operand.vmem [shape: f32[1,128], index: 3, kind: input, shape index: {}]   ;;  %s3351_s4 = inlined_call_operand.vmem [shape: f32[32,128], index: 4, kind: input, shape index: {}]   ;;  %s3352_s5 = inlined_call_operand.vmem [shape: f32[1,128], index: 5, kind: input, shape index: {}]   ;;  %s3353_s6 = inlined_call_operand.vmem [shape: f32[16,32], index: 6, kind: input, shape index: {}]   ;;  %s3354_s7 = inlined_call_operand.vmem [shape: f32[16,32], index: 7, kind: input, shape index: {}]   ;;  %s3355_s8 = inlined_call_operand.hbm [shape: f32[16,16,128], index: 8, kind: output, shape index: {0}]   ;;  %s3356_s9 = inlined_call_operand.vmem [shape: f32[16,64], index: 9, kind: output, shape index: {1}]  }
   0x1   :  { %17 = vsyncpa [#allocation6 + $0x1], 0  ;;  %s2676_s30 = smov 0   ;;  %s2678_s10 = smov 0  }
   0x2   :  { %s2680_s11 = smov 0   ;;  %s2682_s12 = smov 0  }
   0x3 LB: > { %s2697_s13 = sadd.s32 4294967295, %s2619_s12   ;;  %s2227_s14 = sadd.s32 4294967294, %s2619_s12   ;;  %s2619_s12 = sphi %s2682_s12, %s3364_s12   ;;  %s2615_s11 = sphi %s2680_s11, %s3363_s11   ;;  %s2611_s10 = sphi %s2678_s10, %s3362_s10   ;;  %s2607_s30 = sphi %s2676_s30, %s3361_s30  }
   0x4   : > { %s2701_s15 = sadd.s32 1, %s2619_s12   ;;  %s30_s16 = sadd.s32 1, %s2615_s11 }
   0x5   : > { %s27_s17 = ssub.s32 %s2619_s12, %s2701_s15  ;;  %p37_p0 = scmp.ne.s32.totalorder %s2615_s11, %s2611_s10 }
   0x6   : > { %p28_p1 = scmp.eq.s32.totalorder %s27_s17, 0  ;;  %p38_p2 = scmp.eq.s32.totalorder %s2619_s12, 0 }
   0x7   : > { %p224_p3 = scmp.eq.s32.totalorder %s2697_s13, 1  ;;  %p229_p4 = scmp.ne.s32.totalorder %s2611_s10, %s2607_s30 }
   0x8   : > { %s2713_s18 = scalar_select %p28_p1, %s2615_s11, %s30_s16  }
   0x9   : > { %p39_p5 = por %p38_p2, %p37_p0  ;;  %p2715_p6 = por %p224_p3, %p37_p0 }
   0xa   : > { %p230_p7 = scmp.eq.s32.totalorder %s2227_s14, 1  ;;  %p2229_p9 = scmp.ge.s32.totalorder %s2619_s12, 2 }
   0xc   : > { %p2719_p8 = por %p230_p7, %p229_p4  ;;  %287 = sbr.rel (%p2229_p9) target bundleno = 37 (0x25), region = 36 }
  0x11   : > { %290 = sbr.rel (!%p39_p5) target bundleno = 37 (0x25), region = 40  ;;  %s292_s21 = sand.u32 (%p39_p5), 1, %s2615_s11  }
  0x12   : > { %s2231_s22 = sshll.u32 (%p39_p5), %s2619_s12, 3  ;;  %s2230_s23 = sshll.u32 (%p39_p5), %s292_s21, 7 }
  0x13   : > { %s2731_s26 = scalar_lea.vmem (%p39_p5), %s3347_s0, %s2231_s22  ;;  %s294_s27 = scalar_lea.vmem (%p39_p5), [#allocation4], %s2230_s23 }
  0x14   : > { %v355_v0 = vld [vmem:[%s2731_s26] sm:$0xff] (%p39_p5)  ;;  %v357_v1 = vld [vmem:[%s2731_s26 + $0x10] sm:$0xff] (%p39_p5) }
  0x15   : > { %v359_v2 = vld [vmem:[%s2731_s26 + $0x20] sm:$0xff] (%p39_p5)  ;;  %356 = vst [vmem:[%s294_s27] sm:$0xff] (%p39_p5), %v355_v0  ;;  %v361_v3 = vld [vmem:[%s2731_s26 + $0x30] sm:$0xff] (%p39_p5) }
  0x16   : > { %358 = vst [vmem:[%s294_s27 + $0x8] sm:$0xff] %v357_v1  ;;  %v363_v4 = vld [vmem:[%s2731_s26 + $0x40] sm:$0xff]  ;;  %v365_v5 = vld [vmem:[%s2731_s26 + $0x50] sm:$0xff] }
  0x17   : > { %360 = vst [vmem:[%s294_s27 + $0x10] sm:$0xff] %v359_v2  ;;  %v367_v6 = vld [vmem:[%s2731_s26 + $0x60] sm:$0xff]  ;;  %v369_v7 = vld [vmem:[%s2731_s26 + $0x70] sm:$0xff] }
  0x18   : > { %362 = vst [vmem:[%s294_s27 + $0x18] sm:$0xff] %v361_v3  ;;  %v371_v8 = vld [vmem:[%s2731_s26 + $0x80] sm:$0xff]  ;;  %v373_v9 = vld [vmem:[%s2731_s26 + $0x90] sm:$0xff] }
  0x19   : > { %364 = vst [vmem:[%s294_s27 + $0x20] sm:$0xff] %v363_v4  ;;  %v375_v10 = vld [vmem:[%s2731_s26 + $0xa0] sm:$0xff]  ;;  %v377_v11 = vld [vmem:[%s2731_s26 + $0xb0] sm:$0xff] }
  0x1a   : > { %366 = vst [vmem:[%s294_s27 + $0x28] sm:$0xff] %v365_v5  ;;  %v379_v12 = vld [vmem:[%s2731_s26 + $0xc0] sm:$0xff]  ;;  %v381_v13 = vld [vmem:[%s2731_s26 + $0xd0] sm:$0xff] }
  0x1b   : > { %368 = vst [vmem:[%s294_s27 + $0x30] sm:$0xff] %v367_v6  ;;  %v383_v14 = vld [vmem:[%s2731_s26 + $0xe0] sm:$0xff]  ;;  %v385_v15 = vld [vmem:[%s2731_s26 + $0xf0] sm:$0xff] }
  0x1c   : > { %370 = vst [vmem:[%s294_s27 + $0x38] sm:$0xff] %v369_v7 }
  0x1d   : > { %372 = vst [vmem:[%s294_s27 + $0x40] sm:$0xff] %v371_v8 }
  0x1e   : > { %374 = vst [vmem:[%s294_s27 + $0x48] sm:$0xff] %v373_v9 }
  0x1f   : > { %376 = vst [vmem:[%s294_s27 + $0x50] sm:$0xff] %v375_v10 }
  0x20   : > { %378 = vst [vmem:[%s294_s27 + $0x58] sm:$0xff] %v377_v11 }
  0x21   : > { %380 = vst [vmem:[%s294_s27 + $0x60] sm:$0xff] %v379_v12 }
  0x22   : > { %382 = vst [vmem:[%s294_s27 + $0x68] sm:$0xff] %v381_v13 }
  0x23   : > { %384 = vst [vmem:[%s294_s27 + $0x70] sm:$0xff] %v383_v14 }
  0x24   : > { %386 = vst [vmem:[%s294_s27 + $0x78] sm:$0xff] %v385_v15 }
  0x25 PF: > { %p2232_p10 = scmp.ge.s32.totalorder %s2619_s12, 1  ;;  %p405_p11 = scmp.lt.s32.totalorder %s2619_s12, 3 }
  0x27   : > { %p406_p12 = pnand %p2232_p10, %p405_p11 }
  0x28   : > { %s3357_s17 = sand.u32 (!%p406_p12), 1, %s2611_s10   ;;  %p459_p13 = scmp.lt.s32.totalorder (!%p406_p12), %s2697_s13, 1 }
  0x29   : > { %409 = sbr.rel (%p406_p12) target bundleno = 10127 (0x278f), region = 86  ;;  %s2760_s21 = sshll.u32 (!%p406_p12), %s3357_s17, 7 }
  0x2a   : > { %s2783_s14 = scalar_lea.vmem (!%p406_p12), [#allocation4], %s2760_s21  ;;  %s2621_s23 = smov (!%p406_p12), 32  }
  0x2b   : > { %s2622_s28 = smov (!%p406_p12), 64   ;;  %s3360_s17 = sand.u32 (!%p406_p12), 1, %s2611_s10  }
  0x2e   : > { %v498_v16 = vld [vmem:[%s3348_s1 + $0x18] sm:$0xff]  ;;  %v497_v17 = vld [vmem:[%s3348_s1 + $0x10] sm:$0xff]  ;;  %v496_v19 = vld [vmem:[%s3348_s1 + $0x8] sm:$0xff]  ;;  %vm499_vm0 = vcmask 261120   ;;  %s460_s25 = scalar_select %p459_p13, %s2697_s13, 1  ;;  %v629_v43 = vlaneseq }
  0x2f   : > { %2306 = vmatpush.msra.mxu1 %v498_v16  ;;  %v2765_v18 = vld [vmem:[%s3349_s2 + $0x18] sm:$0xff]  ;;  %560 = vmatpush.msra.mxu0 %v498_v16  ;;  %v2775_v20 = vld [vmem:[%s3349_s2 + $0x10] sm:$0xff]  ;;  %v495_v21 = vld [vmem:[%s3348_s1] sm:$0xff] }
  0x30   : > { %722 = vmatpush.msra.mxu2 %v2765_v18  ;;  %791 = vmatpush.msra.mxu3 %v2765_v18  ;;  %v487_v22 = vld [vmem:[%s2783_s14 + $0x60] sm:$0xff]  ;;  %v2789_v23 = vld [vmem:[%s3349_s2 + $0x8] sm:$0xff]  ;;  %v489_v27 = vld [vmem:[%s2783_s14 + $0x70] sm:$0xff]  ;;  %s2826_s26 = sshll.u32 %s460_s25, 3  ;;  %v2852_v46 = vand.u32 127, %v629_v43 }
  0x31   : > { %2307 = vmatpush.msra.mxu1 %v497_v17  ;;  %561 = vmatpush.msra.mxu0 %v497_v17  ;;  %v475_v24 = vld [vmem:[%s2783_s14] sm:$0xff]  ;;  %v488_v26 = vld [vmem:[%s2783_s14 + $0x68] sm:$0xff]  ;;  %v490_v28 = vld [vmem:[%s2783_s14 + $0x78] sm:$0xff]  ;;  %s462_s29 = scalar_lea.vmem %s3353_s6, %s2826_s26  ;;  %s466_s27 = scalar_lea.vmem %s3354_s7, %s2826_s26 }
  0x32   : > { %723 = vmatpush.msra.mxu2 %v2775_v20  ;;  %792 = vmatpush.msra.mxu3 %v2775_v20  ;;  %v2798_v25 = vld [vmem:[%s3349_s2] sm:$0xff]  ;;  %vm631_vm3 = vcmp.lt.s32.totalorder %v2852_v46, 96  ;;  %v476_v2 = vld [vmem:[%s2783_s14 + $0x8] sm:$0xff]  ;;  %s470_s24 = scalar_lea.vmem %s3356_s9, %s2826_s26 }
  0x33   : > { %2308 = vmatpush.msra.mxu1 %v496_v19  ;;  %562 = vmatpush.msra.mxu0 %v496_v19  ;;  %v632_v29 = vld [vmem:[%s462_s29] sm:$0xff] }
  0x34   : > { %724 = vmatpush.msra.mxu2 %v2789_v23  ;;  %793 = vmatpush.msra.mxu3 %v2789_v23  ;;  %v2849_v35 = vld [vmem:[%s3350_s3] ss:$0 sm:$0xff] }
  0x35   : > { %2309 = vmatpush.msra.mxu1 %v495_v21  ;;  %563 = vmatpush.msra.mxu0 %v495_v21  ;;  %v633_v56 = vld [vmem:[%s466_s27] sm:$0xff] }
  0x36   : > { %2250 = vmatmul.msk.f32.vlgmr.msra.gmra.mxu1 %vm499_vm0, %v487_v22  ;;  %2238 = vmatmul.msk.f32.vlgmr.msra.gmra.mxu0 %vm499_vm0, %v475_v24  ;;  %v3111_v46 = vld [vmem:[%s3352_s5] ss:$0 sm:$0xff] }
  0x37   : > { %650 = vmatpush.msrb.mxu1 %v2765_v18  ;;  %725 = vmatpush.msra.mxu2 %v2798_v25 }
  0x38   : > { %794 = vmatpush.msra.mxu3 %v2798_v25 }
  0x39   : > { %929 = vmatpush.msrb.mxu2 %v2765_v18  ;;  %651 = vmatpush.msrb.mxu1 %v2775_v20 }
  0x3a   : > { %998 = vmatpush.msrb.mxu3 %v2765_v18 }
  0x3b   : > { %930 = vmatpush.msrb.mxu2 %v2775_v20  ;;  %652 = vmatpush.msrb.mxu1 %v2789_v23 }
  0x3c   : > { %999 = vmatpush.msrb.mxu3 %v2775_v20 }
  0x3d   : > { %931 = vmatpush.msrb.mxu2 %v2789_v23  ;;  %653 = vmatpush.msrb.mxu1 %v2798_v25 }
  0x3e   : > { %1000 = vmatpush.msrb.mxu3 %v2789_v23  ;;  %2251 = vmatmul.msk.f32.gmra.mxu1 %vm499_vm0, %v488_v26 }
  0x3f   : > { %932 = vmatpush.msrb.mxu2 %v2798_v25  ;;  %860 = vmatpush.msra.mxu1 %v2765_v18 }
  0x40   : > { %1001 = vmatpush.msrb.mxu3 %v2798_v25  ;;  %2239 = vmatmul.msk.f32.gmra.mxu0 %vm499_vm0, %v476_v2 }
  0x41   : > { %861 = vmatpush.msra.mxu1 %v2775_v20 }
  0x43   : > { %862 = vmatpush.msra.mxu1 %v2789_v23 }
  0x45   : > { %863 = vmatpush.msra.mxu1 %v2798_v25 }
  0x46   : > { %2252 = vmatmul.msk.f32.gmra.mxu1 %vm499_vm0, %v489_v27 }
  0x4e   : > { %2253 = vmatmul.msk.f32.gmra.mxu1 %vm499_vm0, %v490_v28 }
  0x56   : > { %2254 = vmatmul.msk.f32.vlgmr.msrb.gmra.mxu1 %vm499_vm0, %v632_v29 }
  0x57   : > { %1067 = vmatpush.msrb.mxu1 %v2765_v18 }
  0x59   : > { %1068 = vmatpush.msrb.mxu1 %v2775_v20 }
  0x5b   : > { %1069 = vmatpush.msrb.mxu1 %v2789_v23 }
  0x5d   : > { %1070 = vmatpush.msrb.mxu1 %v2798_v25 }
  0xb3   : > { %v2838_v30 = vpop.f32.mrf.mxu1  ;;  %v565_v34 = vpop.f32.mrf.mxu0 }
  0xb4   : > { %v566_v36 = vadd.f32 %v2849_v35, %v565_v34 }
  0xbb   : > { %v2840_v31 = vpop.f32.mrf.mxu1 }
  0xbd   : > { %v568_v4 = vpop.f32.mrf.mxu0 }
  0xbe   : > { %v569_v5 = vadd.f32 %v2849_v35, %v568_v4  ;;  %v478_v4 = vld [vmem:[%s2783_s14 + $0x18] sm:$0xff] }
  0xc3   : > { %v2842_v32 = vpop.f32.mrf.mxu1 }
  0xcb   : > { %v2844_v33 = vpop.f32.mrf.mxu1 }
  0xd3   : > { %v655_v37 = vpop.f32.mrf.mxu1 }
  0xd4   : > { %v658_v38 = vadd.f32 %v655_v37, %v566_v36 }
  0xd6   : > { %v2255_v39 = vmul.f32 -1.442695, %v658_v38 }
  0xd8   : > { %2364 = vpow2.f32 %v2255_v39 }
  0xde   : > { %v2365_v40 = vpop.eup %2364 }
  0xdf   : > { %v662_v41 = vadd.f32 1.0, %v2365_v40  ;;  %v477_v40 = vld [vmem:[%s2783_s14 + $0x10] sm:$0xff] }
  0xe0   : > { %2240 = vmatmul.msk.f32.gmra.mxu0 %vm499_vm0, %v477_v40 }
  0xe1   : > { %2366 = vrcp.f32 %v662_v41  ;;  %v674_v47 = vand.u32 2147483648, %v662_v41  ;;  %v672_v49 = vand.u32 2147483647, %v662_v41  ;;  %vm668_vm2 = vweird.f32 %v662_v41 }
  0xe2   : > { %2368 = vtanh.f32 %v658_v38 }
  0xe3   : > { %v675_v51 = vor.u32 1.1754944e-38, %v674_v47  ;;  %vm673_vm5 = vcmp.eq.f32.partialorder %v672_v49, 8.507059e+37 }
  0xe7   : > { %v2367_v42 = vpop.eup %2366 }
  0xe8   : > { %v664_v44 = vmul.f32 %v2367_v42, %v662_v41  ;;  %vm669_vm1 = vweird.f32 %v2367_v42  ;;  %v2369_v53 = vpop.eup %2368  ;;  %2241 = vmatmul.msk.f32.gmra.mxu0 %vm499_vm0, %v478_v4 }
  0xe9   : > { %vm670_vm4 = vmor %vm668_vm2, %vm669_vm1 }
  0xea   : > { %v665_v45 = vsub.f32 1.0, %v664_v44 }
  0xec   : > { %v666_v48 = vmul.f32 %v2367_v42, %v665_v45 }
  0xee   : > { %v667_v50 = vadd.f32 %v2367_v42, %v666_v48 }
  0xf0   : > { %v671_v52 = vsel %vm670_vm4, %v2367_v42, %v667_v50 }
  0xf1   : > { %v676_v54 = vsel %vm673_vm5, %v675_v51, %v671_v52 }
  0xf2   : > { %v679_v55 = vsel %vm631_vm3, %v676_v54, %v2369_v53 }
  0xf3   : > { %686 = vrot.lane.b32.xlu0 %v679_v55, %s2621_s23 }
  0xfb   : > { %681 = vrot.lane.b32.xlu0 %v633_v56, %s2621_s23 }
 0x15d   : > { %v571_v42 = vpop.f32.mrf.mxu0 }
 0x15e   : > { %v572_v43 = vadd.f32 %v2849_v35, %v571_v42 }
 0x165   : > { %v687_v57 = vpop.permute.xlu0 %686 }
 0x166   : > { %v689_v58 = vmul.f32 %v687_v57, %v679_v55 }
 0x168   : > { %691 = vrot.lane.b32.xlu1 %v689_v58, %s2621_s23 }
 0x16d   : > { %v682_v59 = vpop.permute.xlu0 %681 }
 0x16e   : > { %v684_v60 = vmul.f32 %v682_v59, %v679_v55 }
 0x1da   : > { %v692_v61 = vpop.permute.xlu1 %691 }
 0x1db   : > { %v694_v62 = vadd.f32 %v692_v61, %v684_v60 }
 0x1dd   : > { %2370 = vtanh.f32 %v694_v62 }
 0x1e3   : > { %v2371_v63 = vpop.eup %2370 }
 0x1e4   : > { %697 = vrot.lane.b32.xlu1 %v2371_v63, %s2621_s23 }
 0x256   : > { %v698_v0 = vpop.permute.xlu1 %697 }
 0x257   : > { %v700_v1 = vmul.f32 %v698_v0, %v679_v55 }
 0x259   : > { %702 = vrot.lane.b32.xlu2 %v700_v1, %s2622_s28 }
 0x2b3   : > { %v703_v3 = vpop.permute.xlu2 %702 }
 0x2b4   : > { %705 = vst.msk [vmem:[#allocation3] sm:$0xff] %vm499_vm0, %v703_v3  ;;  %2256 = vmatmul.msk.f32.vlgmr.msra.gmra.mxu2 %vm499_vm0, %v703_v3 }
 0x2b5   : > { %1136 = vmatpush.msra.mxu2 %v2765_v18 }
 0x2b7   : > { %1137 = vmatpush.msra.mxu2 %v2775_v20 }
 0x2b9   : > { %1138 = vmatpush.msra.mxu2 %v2789_v23 }
 0x2bb   : > { %1139 = vmatpush.msra.mxu2 %v2798_v25 }
 0x337   : > { %v727_v6 = vpop.f32.mrf.mxu2 }
 0x338   : > { %v730_v7 = vadd.f32 %v727_v6, %v569_v5 }
 0x33a   : > { %v2257_v8 = vmul.f32 -1.442695, %v730_v7 }
 0x33c   : > { %2372 = vpow2.f32 %v2257_v8  ;;  %v574_v8 = vpop.f32.mrf.mxu0 }
 0x342   : > { %v2373_v9 = vpop.eup %2372 }
 0x343   : > { %v734_v10 = vadd.f32 1.0, %v2373_v9  ;;  %v575_v9 = vadd.f32 %v2849_v35, %v574_v8 }
 0x345   : > { %2374 = vrcp.f32 %v734_v10  ;;  %v746_v14 = vand.u32 2147483648, %v734_v10  ;;  %v744_v16 = vand.u32 2147483647, %v734_v10  ;;  %vm740_vm7 = vweird.f32 %v734_v10 }
 0x346   : > { %2376 = vtanh.f32 %v730_v7 }
 0x347   : > { %v747_v19 = vor.u32 1.1754944e-38, %v746_v14  ;;  %vm745_vm9 = vcmp.eq.f32.partialorder %v744_v16, 8.507059e+37 }
 0x34b   : > { %v2375_v11 = vpop.eup %2374 }
 0x34c   : > { %v736_v12 = vmul.f32 %v2375_v11, %v734_v10  ;;  %vm741_vm6 = vweird.f32 %v2375_v11  ;;  %v2377_v22 = vpop.eup %2376 }
 0x34d   : > { %vm742_vm8 = vmor %vm740_vm7, %vm741_vm6 }
 0x34e   : > { %v737_v13 = vsub.f32 1.0, %v736_v12 }
 0x350   : > { %v738_v15 = vmul.f32 %v2375_v11, %v737_v13 }
 0x352   : > { %v739_v17 = vadd.f32 %v2375_v11, %v738_v15 }
 0x354   : > { %v743_v21 = vsel %vm742_vm8, %v2375_v11, %v739_v17 }
 0x355   : > { %v748_v24 = vsel %vm745_vm9, %v747_v19, %v743_v21 }
 0x356   : > { %v751_v26 = vsel %vm631_vm3, %v748_v24, %v2377_v22 }
 0x357   : > { %754 = vrot.lane.b32.xlu2 %v751_v26, %s2621_s23  ;;  %v752_v29 = vmul.f32 %v751_v26, %v694_v62 }
 0x3b1   : > { %v755_v27 = vpop.permute.xlu2 %754 }
 0x3b2   : > { %v757_v28 = vmul.f32 %v755_v27, %v751_v26 }
 0x3b4   : > { %759 = vrot.lane.b32.xlu0 %v757_v28, %s2621_s23 }
 0x426   : > { %v760_v34 = vpop.permute.xlu0 %759 }
 0x427   : > { %v762_v36 = vadd.f32 %v760_v34, %v752_v29 }
 0x429   : > { %2378 = vtanh.f32 %v762_v36 }
 0x42f   : > { %v2379_v37 = vpop.eup %2378 }
 0x430   : > { %765 = vrot.lane.b32.xlu1 %v2379_v37, %s2621_s23 }
 0x4a2   : > { %v766_v38 = vpop.permute.xlu1 %765 }
 0x4a3   : > { %v768_v39 = vmul.f32 %v766_v38, %v751_v26 }
 0x4a5   : > { %770 = vrot.lane.b32.xlu2 %v768_v39, %s2622_s28 }
 0x4ff   : > { %v771_v41 = vpop.permute.xlu2 %770 }
 0x500   : > { %774 = vst.msk [vmem:[#allocation3 + $0x8] sm:$0xff] %vm499_vm0, %v771_v41  ;;  %2258 = vmatmul.msk.f32.vlgmr.msra.gmra.mxu3 %vm499_vm0, %v771_v41 }
 0x501   : > { %1205 = vmatpush.msra.mxu3 %v2765_v18 }
 0x503   : > { %1206 = vmatpush.msra.mxu3 %v2775_v20 }
 0x505   : > { %1207 = vmatpush.msra.mxu3 %v2789_v23 }
 0x507   : > { %1208 = vmatpush.msra.mxu3 %v2798_v25 }
 0x583   : > { %v796_v44 = vpop.f32.mrf.mxu3 }
 0x584   : > { %v799_v45 = vadd.f32 %v796_v44, %v572_v43  ;;  %v479_v44 = vld [vmem:[%s2783_s14 + $0x20] sm:$0xff] }
 0x585   : > { %2242 = vmatmul.msk.f32.gmra.mxu0 %vm499_vm0, %v479_v44 }
 0x586   : > { %v2259_v47 = vmul.f32 -1.442695, %v799_v45 }
 0x588   : > { %2380 = vpow2.f32 %v2259_v47 }
 0x58e   : > { %v2381_v48 = vpop.eup %2380 }
 0x58f   : > { %v803_v49 = vadd.f32 1.0, %v2381_v48 }
 0x591   : > { %2382 = vrcp.f32 %v803_v49  ;;  %v815_v53 = vand.u32 2147483648, %v803_v49  ;;  %v813_v55 = vand.u32 2147483647, %v803_v49  ;;  %vm809_vm11 = vweird.f32 %v803_v49 }
 0x592   : > { %2384 = vtanh.f32 %v799_v45 }
 0x593   : > { %v816_v57 = vor.u32 1.1754944e-38, %v815_v53  ;;  %vm814_vm13 = vcmp.eq.f32.partialorder %v813_v55, 8.507059e+37 }
 0x597   : > { %v2383_v50 = vpop.eup %2382 }
 0x598   : > { %v805_v51 = vmul.f32 %v2383_v50, %v803_v49  ;;  %vm810_vm10 = vweird.f32 %v2383_v50  ;;  %v2385_v59 = vpop.eup %2384 }
 0x599   : > { %vm811_vm12 = vmor %vm809_vm11, %vm810_vm10 }
 0x59a   : > { %v806_v52 = vsub.f32 1.0, %v805_v51 }
 0x59c   : > { %v807_v54 = vmul.f32 %v2383_v50, %v806_v52 }
 0x59e   : > { %v808_v56 = vadd.f32 %v2383_v50, %v807_v54 }
 0x5a0   : > { %v812_v58 = vsel %vm811_vm12, %v2383_v50, %v808_v56 }
 0x5a1   : > { %v817_v60 = vsel %vm814_vm13, %v816_v57, %v812_v58 }
 0x5a2   : > { %v820_v61 = vsel %vm631_vm3, %v817_v60, %v2385_v59 }
 0x5a3   : > { %823 = vrot.lane.b32.xlu0 %v820_v61, %s2621_s23  ;;  %v821_v0 = vmul.f32 %v820_v61, %v762_v36 }
 0x602   : > { %v577_v47 = vpop.f32.mrf.mxu0 }
 0x603   : > { %v578_v48 = vadd.f32 %v2849_v35, %v577_v47  ;;  %v481_v47 = vld [vmem:[%s2783_s14 + $0x30] sm:$0xff] }
 0x615   : > { %v824_v62 = vpop.permute.xlu0 %823 }
 0x616   : > { %v826_v63 = vmul.f32 %v824_v62, %v820_v61 }
 0x618   : > { %828 = vrot.lane.b32.xlu1 %v826_v63, %s2621_s23 }
 0x68a   : > { %v829_v1 = vpop.permute.xlu1 %828 }
 0x68b   : > { %v831_v2 = vadd.f32 %v829_v1, %v821_v0 }
 0x68d   : > { %2386 = vtanh.f32 %v831_v2 }
 0x693   : > { %v2387_v3 = vpop.eup %2386 }
 0x694   : > { %834 = vrot.lane.b32.xlu2 %v2387_v3, %s2621_s23 }
 0x6ee   : > { %v835_v5 = vpop.permute.xlu2 %834 }
 0x6ef   : > { %v837_v6 = vmul.f32 %v835_v5, %v820_v61 }
 0x6f1   : > { %839 = vrot.lane.b32.xlu0 %v837_v6, %s2622_s28 }
 0x763   : > { %v840_v7 = vpop.permute.xlu0 %839 }
 0x764   : > { %843 = vst.msk [vmem:[#allocation3 + $0x10] sm:$0xff] %vm499_vm0, %v840_v7  ;;  %2260 = vmatmul.msk.f32.vlgmr.msra.gmra.mxu1 %vm499_vm0, %v840_v7 }
 0x765   : > { %1274 = vmatpush.msra.mxu1 %v2765_v18 }
 0x767   : > { %1275 = vmatpush.msra.mxu1 %v2775_v20 }
 0x769   : > { %1276 = vmatpush.msra.mxu1 %v2789_v23 }
 0x76b   : > { %1277 = vmatpush.msra.mxu1 %v2798_v25 }
 0x7e1   : > { %v865_v10 = vpop.f32.mrf.mxu1 }
 0x7e2   : > { %v868_v11 = vadd.f32 %v865_v10, %v575_v9  ;;  %v480_v10 = vld [vmem:[%s2783_s14 + $0x28] sm:$0xff] }
 0x7e3   : > { %2243 = vmatmul.msk.f32.gmra.mxu0 %vm499_vm0, %v480_v10 }
 0x7e4   : > { %v2261_v12 = vmul.f32 -1.442695, %v868_v11 }
 0x7e6   : > { %2388 = vpow2.f32 %v2261_v12 }
 0x7eb   : > { %2244 = vmatmul.msk.f32.gmra.mxu0 %vm499_vm0, %v481_v47 }
 0x7ec   : > { %v2389_v13 = vpop.eup %2388 }
 0x7ed   : > { %v872_v14 = vadd.f32 1.0, %v2389_v13 }
 0x7ef   : > { %2390 = vrcp.f32 %v872_v14  ;;  %v884_v19 = vand.u32 2147483648, %v872_v14  ;;  %v882_v22 = vand.u32 2147483647, %v872_v14  ;;  %vm878_vm15 = vweird.f32 %v872_v14 }
 0x7f0   : > { %2392 = vtanh.f32 %v868_v11 }
 0x7f1   : > { %v885_v26 = vor.u32 1.1754944e-38, %v884_v19  ;;  %vm883_vm2 = vcmp.eq.f32.partialorder %v882_v22, 8.507059e+37 }
 0x7f5   : > { %v2391_v15 = vpop.eup %2390 }
 0x7f6   : > { %v874_v16 = vmul.f32 %v2391_v15, %v872_v14  ;;  %vm879_vm14 = vweird.f32 %v2391_v15  ;;  %v2393_v28 = vpop.eup %2392 }
 0x7f7   : > { %vm880_vm1 = vmor %vm878_vm15, %vm879_vm14 }
 0x7f8   : > { %v875_v17 = vsub.f32 1.0, %v874_v16 }
 0x7fa   : > { %v876_v21 = vmul.f32 %v2391_v15, %v875_v17 }
 0x7fc   : > { %v877_v24 = vadd.f32 %v2391_v15, %v876_v21 }
 0x7fe   : > { %v881_v27 = vsel %vm880_vm1, %v2391_v15, %v877_v24 }
 0x7ff   : > { %v886_v29 = vsel %vm883_vm2, %v885_v26, %v881_v27 }
 0x800   : > { %v889_v34 = vsel %vm631_vm3, %v886_v29, %v2393_v28 }
 0x801   : > { %892 = vrot.lane.b32.xlu1 %v889_v34, %s2621_s23  ;;  %v890_v38 = vmul.f32 %v889_v34, %v831_v2 }
 0x860   : > { %v580_v12 = vpop.f32.mrf.mxu0 }
 0x861   : > { %v581_v13 = vadd.f32 %v2849_v35, %v580_v12 }
 0x873   : > { %v893_v36 = vpop.permute.xlu1 %892 }
 0x874   : > { %v895_v37 = vmul.f32 %v893_v36, %v889_v34 }
 0x876   : > { %897 = vrot.lane.b32.xlu2 %v895_v37, %s2621_s23 }
 0x8d0   : > { %v898_v39 = vpop.permute.xlu2 %897 }
 0x8d1   : > { %v900_v40 = vadd.f32 %v898_v39, %v890_v38 }
 0x8d3   : > { %2394 = vtanh.f32 %v900_v40 }
 0x8d9   : > { %v2395_v41 = vpop.eup %2394 }
 0x8da   : > { %903 = vrot.lane.b32.xlu0 %v2395_v41, %s2621_s23 }
 0x94c   : > { %v904_v42 = vpop.permute.xlu0 %903 }
 0x94d   : > { %v906_v43 = vmul.f32 %v904_v42, %v889_v34 }
 0x94f   : > { %908 = vrot.lane.b32.xlu1 %v906_v43, %s2622_s28 }
 0x9c1   : > { %v909_v45 = vpop.permute.xlu1 %908 }
 0x9c2   : > { %912 = vst.msk [vmem:[#allocation3 + $0x18] sm:$0xff] %vm499_vm0, %v909_v45  ;;  %2262 = vmatmul.msk.f32.vlgmr.msrb.gmra.mxu2 %vm499_vm0, %v909_v45 }
 0x9c3   : > { %1343 = vmatpush.msrb.mxu2 %v2765_v18 }
 0x9c5   : > { %1344 = vmatpush.msrb.mxu2 %v2775_v20 }
 0x9c7   : > { %1345 = vmatpush.msrb.mxu2 %v2789_v23 }
 0x9c9   : > { %1346 = vmatpush.msrb.mxu2 %v2798_v25 }
 0xa45   : > { %v934_v49 = vpop.f32.mrf.mxu2 }
 0xa46   : > { %v937_v50 = vadd.f32 %v934_v49, %v578_v48 }
 0xa48   : > { %v2263_v51 = vmul.f32 -1.442695, %v937_v50 }
 0xa4a   : > { %2396 = vpow2.f32 %v2263_v51  ;;  %v583_v51 = vpop.f32.mrf.mxu0 }
 0xa50   : > { %v2397_v52 = vpop.eup %2396 }
 0xa51   : > { %v941_v53 = vadd.f32 1.0, %v2397_v52  ;;  %v584_v52 = vadd.f32 %v2849_v35, %v583_v51 }
 0xa53   : > { %2398 = vrcp.f32 %v941_v53  ;;  %v953_v57 = vand.u32 2147483648, %v941_v53  ;;  %v951_v59 = vand.u32 2147483647, %v941_v53  ;;  %vm947_vm5 = vweird.f32 %v941_v53 }
 0xa54   : > { %2400 = vtanh.f32 %v937_v50 }
 0xa55   : > { %v954_v61 = vor.u32 1.1754944e-38, %v953_v57  ;;  %vm952_vm7 = vcmp.eq.f32.partialorder %v951_v59, 8.507059e+37 }
 0xa59   : > { %v2399_v54 = vpop.eup %2398 }
 0xa5a   : > { %v943_v55 = vmul.f32 %v2399_v54, %v941_v53  ;;  %vm948_vm4 = vweird.f32 %v2399_v54  ;;  %v2401_v63 = vpop.eup %2400 }
 0xa5b   : > { %vm949_vm6 = vmor %vm947_vm5, %vm948_vm4 }
 0xa5c   : > { %v944_v56 = vsub.f32 1.0, %v943_v55 }
 0xa5e   : > { %v945_v58 = vmul.f32 %v2399_v54, %v944_v56 }
 0xa60   : > { %v946_v60 = vadd.f32 %v2399_v54, %v945_v58 }
 0xa62   : > { %v950_v62 = vsel %vm949_vm6, %v2399_v54, %v946_v60 }
 0xa63   : > { %v955_v0 = vsel %vm952_vm7, %v954_v61, %v950_v62 }
 0xa64   : > { %v958_v1 = vsel %vm631_vm3, %v955_v0, %v2401_v63 }
 0xa65   : > { %961 = vrot.lane.b32.xlu2 %v958_v1, %s2621_s23  ;;  %v959_v4 = vmul.f32 %v958_v1, %v900_v40 }
 0xabf   : > { %v962_v2 = vpop.permute.xlu2 %961 }
 0xac0   : > { %v964_v3 = vmul.f32 %v962_v2, %v958_v1 }
 0xac2   : > { %966 = vrot.lane.b32.xlu0 %v964_v3, %s2621_s23 }
 0xb34   : > { %v967_v5 = vpop.permute.xlu0 %966 }
 0xb35   : > { %v969_v6 = vadd.f32 %v967_v5, %v959_v4 }
 0xb37   : > { %2402 = vtanh.f32 %v969_v6 }
 0xb3d   : > { %v2403_v7 = vpop.eup %2402 }
 0xb3e   : > { %972 = vrot.lane.b32.xlu1 %v2403_v7, %s2621_s23 }
 0xbb0   : > { %v973_v8 = vpop.permute.xlu1 %972 }
 0xbb1   : > { %v975_v9 = vmul.f32 %v973_v8, %v958_v1 }
 0xbb3   : > { %977 = vrot.lane.b32.xlu2 %v975_v9, %s2622_s28 }
 0xc0d   : > { %v978_v11 = vpop.permute.xlu2 %977 }
 0xc0e   : > { %981 = vst.msk [vmem:[#allocation3 + $0x20] sm:$0xff] %vm499_vm0, %v978_v11  ;;  %2264 = vmatmul.msk.f32.vlgmr.msrb.gmra.mxu3 %vm499_vm0, %v978_v11 }
 0xc0f   : > { %1412 = vmatpush.msrb.mxu3 %v2765_v18 }
 0xc11   : > { %1413 = vmatpush.msrb.mxu3 %v2775_v20 }
 0xc13   : > { %1414 = vmatpush.msrb.mxu3 %v2789_v23 }
 0xc15   : > { %1415 = vmatpush.msrb.mxu3 %v2798_v25 }
 0xc91   : > { %v1003_v14 = vpop.f32.mrf.mxu3 }
 0xc92   : > { %v1006_v15 = vadd.f32 %v1003_v14, %v581_v13  ;;  %v482_v14 = vld [vmem:[%s2783_s14 + $0x38] sm:$0xff] }
 0xc93   : > { %2245 = vmatmul.msk.f32.gmra.mxu0 %vm499_vm0, %v482_v14 }
 0xc94   : > { %v2265_v16 = vmul.f32 -1.442695, %v1006_v15 }
 0xc96   : > { %2404 = vpow2.f32 %v2265_v16 }
 0xc9c   : > { %v2405_v17 = vpop.eup %2404 }
 0xc9d   : > { %v1010_v19 = vadd.f32 1.0, %v2405_v17 }
 0xc9f   : > { %2406 = vrcp.f32 %v1010_v19  ;;  %v1022_v26 = vand.u32 2147483648, %v1010_v19  ;;  %v1020_v28 = vand.u32 2147483647, %v1010_v19  ;;  %vm1016_vm9 = vweird.f32 %v1010_v19 }
 0xca0   : > { %2408 = vtanh.f32 %v1006_v15 }
 0xca1   : > { %v1023_v34 = vor.u32 1.1754944e-38, %v1022_v26  ;;  %vm1021_vm11 = vcmp.eq.f32.partialorder %v1020_v28, 8.507059e+37 }
 0xca5   : > { %v2407_v21 = vpop.eup %2406 }
 0xca6   : > { %v1012_v22 = vmul.f32 %v2407_v21, %v1010_v19  ;;  %vm1017_vm8 = vweird.f32 %v2407_v21  ;;  %v2409_v37 = vpop.eup %2408 }
 0xca7   : > { %vm1018_vm10 = vmor %vm1016_vm9, %vm1017_vm8 }
 0xca8   : > { %v1013_v24 = vsub.f32 1.0, %v1012_v22 }
 0xcaa   : > { %v1014_v27 = vmul.f32 %v2407_v21, %v1013_v24 }
 0xcac   : > { %v1015_v29 = vadd.f32 %v2407_v21, %v1014_v27 }
 0xcae   : > { %v1019_v36 = vsel %vm1018_vm10, %v2407_v21, %v1015_v29 }
 0xcaf   : > { %v1024_v38 = vsel %vm1021_vm11, %v1023_v34, %v1019_v36 }
 0xcb0   : > { %v1027_v39 = vsel %vm631_vm3, %v1024_v38, %v2409_v37 }
 0xcb1   : > { %1030 = vrot.lane.b32.xlu0 %v1027_v39, %s2621_s23  ;;  %v1028_v42 = vmul.f32 %v1027_v39, %v969_v6 }
 0xd10   : > { %v586_v16 = vpop.f32.mrf.mxu0 }
 0xd11   : > { %v587_v17 = vadd.f32 %v2849_v35, %v586_v16  ;;  %v484_v16 = vld [vmem:[%s2783_s14 + $0x48] sm:$0xff] }
 0xd23   : > { %v1031_v40 = vpop.permute.xlu0 %1030 }
 0xd24   : > { %v1033_v41 = vmul.f32 %v1031_v40, %v1027_v39 }
 0xd26   : > { %1035 = vrot.lane.b32.xlu1 %v1033_v41, %s2621_s23 }
 0xd98   : > { %v1036_v43 = vpop.permute.xlu1 %1035 }
 0xd99   : > { %v1038_v44 = vadd.f32 %v1036_v43, %v1028_v42 }
 0xd9b   : > { %2410 = vtanh.f32 %v1038_v44 }
 0xda1   : > { %v2411_v45 = vpop.eup %2410 }
 0xda2   : > { %1041 = vrot.lane.b32.xlu2 %v2411_v45, %s2621_s23 }
 0xdfc   : > { %v1042_v48 = vpop.permute.xlu2 %1041 }
 0xdfd   : > { %v1044_v49 = vmul.f32 %v1042_v48, %v1027_v39 }
 0xdff   : > { %1046 = vrot.lane.b32.xlu0 %v1044_v49, %s2622_s28 }
 0xe71   : > { %v1047_v50 = vpop.permute.xlu0 %1046 }
 0xe72   : > { %1050 = vst.msk [vmem:[#allocation3 + $0x28] sm:$0xff] %vm499_vm0, %v1047_v50  ;;  %2266 = vmatmul.msk.f32.vlgmr.msrb.gmra.mxu1 %vm499_vm0, %v1047_v50 }
 0xe73   : > { %1481 = vmatpush.msrb.mxu1 %v2765_v18 }
 0xe75   : > { %1482 = vmatpush.msrb.mxu1 %v2775_v20 }
 0xe77   : > { %1483 = vmatpush.msrb.mxu1 %v2789_v23 }
 0xe79   : > { %1484 = vmatpush.msrb.mxu1 %v2798_v25 }
 0xeef   : > { %v1072_v53 = vpop.f32.mrf.mxu1 }
 0xef0   : > { %v1075_v54 = vadd.f32 %v1072_v53, %v584_v52  ;;  %v483_v53 = vld [vmem:[%s2783_s14 + $0x40] sm:$0xff] }
 0xef1   : > { %2246 = vmatmul.msk.f32.gmra.mxu0 %vm499_vm0, %v483_v53  ;;  %v485_v53 = vld [vmem:[%s2783_s14 + $0x50] sm:$0xff] }
 0xef2   : > { %v2267_v55 = vmul.f32 -1.442695, %v1075_v54 }
 0xef4   : > { %2412 = vpow2.f32 %v2267_v55 }
 0xef9   : > { %2247 = vmatmul.msk.f32.gmra.mxu0 %vm499_vm0, %v484_v16 }
 0xefa   : > { %v2413_v56 = vpop.eup %2412 }
 0xefb   : > { %v1079_v57 = vadd.f32 1.0, %v2413_v56 }
 0xefd   : > { %2414 = vrcp.f32 %v1079_v57  ;;  %v1091_v61 = vand.u32 2147483648, %v1079_v57  ;;  %v1089_v63 = vand.u32 2147483647, %v1079_v57  ;;  %vm1085_vm13 = vweird.f32 %v1079_v57 }
 0xefe   : > { %2416 = vtanh.f32 %v1075_v54 }
 0xeff   : > { %v1092_v1 = vor.u32 1.1754944e-38, %v1091_v61  ;;  %vm1090_vm15 = vcmp.eq.f32.partialorder %v1089_v63, 8.507059e+37 }
 0xf01   : > { %2248 = vmatmul.msk.f32.gmra.mxu0 %vm499_vm0, %v485_v53 }
 0xf03   : > { %v2415_v58 = vpop.eup %2414 }
 0xf04   : > { %v1081_v59 = vmul.f32 %v2415_v58, %v1079_v57  ;;  %vm1086_vm12 = vweird.f32 %v2415_v58  ;;  %v2417_v3 = vpop.eup %2416 }
 0xf05   : > { %vm1087_vm14 = vmor %vm1085_vm13, %vm1086_vm12 }
 0xf06   : > { %v1082_v60 = vsub.f32 1.0, %v1081_v59 }
 0xf08   : > { %v1083_v62 = vmul.f32 %v2415_v58, %v1082_v60 }
 0xf0a   : > { %v1084_v0 = vadd.f32 %v2415_v58, %v1083_v62 }
 0xf0c   : > { %v1088_v2 = vsel %vm1087_vm14, %v2415_v58, %v1084_v0 }
 0xf0d   : > { %v1093_v4 = vsel %vm1090_vm15, %v1092_v1, %v1088_v2 }
 0xf0e   : > { %v1096_v5 = vsel %vm631_vm3, %v1093_v4, %v2417_v3 }
 0xf0f   : > { %1099 = vrot.lane.b32.xlu1 %v1096_v5, %s2621_s23  ;;  %v1097_v8 = vmul.f32 %v1096_v5, %v1038_v44 }
 0xf6e   : > { %v589_v55 = vpop.f32.mrf.mxu0 }
 0xf6f   : > { %v590_v56 = vadd.f32 %v2849_v35, %v589_v55 }
 0xf81   : > { %v1100_v6 = vpop.permute.xlu1 %1099 }
 0xf82   : > { %v1102_v7 = vmul.f32 %v1100_v6, %v1096_v5 }
 0xf84   : > { %1104 = vrot.lane.b32.xlu2 %v1102_v7, %s2621_s23 }
 0xfde   : > { %v1105_v9 = vpop.permute.xlu2 %1104 }
 0xfdf   : > { %v1107_v10 = vadd.f32 %v1105_v9, %v1097_v8 }
 0xfe1   : > { %2418 = vtanh.f32 %v1107_v10 }
 0xfe7   : > { %v2419_v11 = vpop.eup %2418 }
 0xfe8   : > { %1110 = vrot.lane.b32.xlu0 %v2419_v11, %s2621_s23 }
0x105a   : > { %v1111_v12 = vpop.permute.xlu0 %1110 }
0x105b   : > { %v1113_v13 = vmul.f32 %v1111_v12, %v1096_v5 }
0x105d   : > { %1115 = vrot.lane.b32.xlu1 %v1113_v13, %s2622_s28 }
0x10cf   : > { %v1116_v15 = vpop.permute.xlu1 %1115 }
0x10d0   : > { %1119 = vst.msk [vmem:[#allocation3 + $0x30] sm:$0xff] %vm499_vm0, %v1116_v15  ;;  %2268 = vmatmul.msk.f32.vlgmr.msra.gmra.mxu2 %vm499_vm0, %v1116_v15 }
0x10d1   : > { %1550 = vmatpush.msra.mxu2 %v2765_v18 }
0x10d3   : > { %1551 = vmatpush.msra.mxu2 %v2775_v20 }
0x10d5   : > { %1552 = vmatpush.msra.mxu2 %v2789_v23 }
0x10d7   : > { %1553 = vmatpush.msra.mxu2 %v2798_v25 }
0x1153   : > { %v1141_v19 = vpop.f32.mrf.mxu2 }
0x1154   : > { %v1144_v21 = vadd.f32 %v1141_v19, %v587_v17 }
0x1156   : > { %v2269_v22 = vmul.f32 -1.442695, %v1144_v21 }
0x1158   : > { %2420 = vpow2.f32 %v2269_v22  ;;  %v592_v22 = vpop.f32.mrf.mxu0 }
0x115e   : > { %v2421_v24 = vpop.eup %2420 }
0x115f   : > { %v1148_v26 = vadd.f32 1.0, %v2421_v24  ;;  %v593_v24 = vadd.f32 %v2849_v35, %v592_v22  ;;  %v3019_v22 = vld [vmem:[%s3350_s3] ss:$0 sm:$0xff] }
0x1160   : > { %v595_v55 = vpop.f32.mrf.mxu0 }
0x1161   : > { %2422 = vrcp.f32 %v1148_v26  ;;  %v1160_v34 = vand.u32 2147483648, %v1148_v26  ;;  %v1158_v37 = vand.u32 2147483647, %v1148_v26  ;;  %vm1154_vm2 = vweird.f32 %v1148_v26 }
0x1162   : > { %2424 = vtanh.f32 %v1144_v21 }
0x1163   : > { %v1161_v39 = vor.u32 1.1754944e-38, %v1160_v34  ;;  %vm1159_vm5 = vcmp.eq.f32.partialorder %v1158_v37, 8.507059e+37 }
0x1167   : > { %v2423_v27 = vpop.eup %2422 }
0x1168   : > { %v1150_v28 = vmul.f32 %v2423_v27, %v1148_v26  ;;  %vm1155_vm1 = vweird.f32 %v2423_v27  ;;  %v2425_v41 = vpop.eup %2424 }
0x1169   : > { %vm1156_vm4 = vmor %vm1154_vm2, %vm1155_vm1 }
0x116a   : > { %v1151_v29 = vsub.f32 1.0, %v1150_v28 }
0x116c   : > { %v1152_v36 = vmul.f32 %v2423_v27, %v1151_v29 }
0x116e   : > { %v1153_v38 = vadd.f32 %v2423_v27, %v1152_v36 }
0x1170   : > { %v1157_v40 = vsel %vm1156_vm4, %v2423_v27, %v1153_v38 }
0x1171   : > { %v1162_v42 = vsel %vm1159_vm5, %v1161_v39, %v1157_v40 }
0x1172   : > { %v1165_v43 = vsel %vm631_vm3, %v1162_v42, %v2425_v41 }
0x1173   : > { %1168 = vrot.lane.b32.xlu2 %v1165_v43, %s2621_s23  ;;  %v1166_v47 = vmul.f32 %v1165_v43, %v1107_v10 }
0x11cd   : > { %v1169_v44 = vpop.permute.xlu2 %1168 }
0x11ce   : > { %v1171_v45 = vmul.f32 %v1169_v44, %v1165_v43 }
0x11d0   : > { %1173 = vrot.lane.b32.xlu0 %v1171_v45, %s2621_s23 }
0x1242   : > { %v1174_v48 = vpop.permute.xlu0 %1173 }
0x1243   : > { %v1176_v49 = vadd.f32 %v1174_v48, %v1166_v47 }
0x1245   : > { %2426 = vtanh.f32 %v1176_v49 }
0x124b   : > { %v2427_v50 = vpop.eup %2426 }
0x124c   : > { %1179 = vrot.lane.b32.xlu1 %v2427_v50, %s2621_s23 }
0x12be   : > { %v1180_v51 = vpop.permute.xlu1 %1179 }
0x12bf   : > { %v1182_v52 = vmul.f32 %v1180_v51, %v1165_v43 }
0x12c1   : > { %1184 = vrot.lane.b32.xlu2 %v1182_v52, %s2622_s28 }
0x131b   : > { %v1185_v54 = vpop.permute.xlu2 %1184 }
0x131c   : > { %1188 = vst.msk [vmem:[#allocation3 + $0x38] sm:$0xff] %vm499_vm0, %v1185_v54  ;;  %2270 = vmatmul.msk.f32.vlgmr.msra.gmra.mxu3 %vm499_vm0, %v1185_v54 }
0x131d   : > { %1619 = vmatpush.msra.mxu3 %v2765_v18 }
0x131f   : > { %1620 = vmatpush.msra.mxu3 %v2775_v20 }
0x1321   : > { %1621 = vmatpush.msra.mxu3 %v2789_v23 }
0x1323   : > { %1622 = vmatpush.msra.mxu3 %v2798_v25 }
0x139f   : > { %v1210_v57 = vpop.f32.mrf.mxu3 }
0x13a0   : > { %v1213_v58 = vadd.f32 %v1210_v57, %v590_v56  ;;  %v596_v56 = vadd.f32 %v2849_v35, %v595_v55 }
0x13a2   : > { %v2271_v59 = vmul.f32 -1.442695, %v1213_v58 }
0x13a4   : > { %2428 = vpow2.f32 %v2271_v59 }
0x13aa   : > { %v2429_v60 = vpop.eup %2428 }
0x13ab   : > { %v1217_v61 = vadd.f32 1.0, %v2429_v60 }
0x13ad   : > { %2430 = vrcp.f32 %v1217_v61  ;;  %v1229_v1 = vand.u32 2147483648, %v1217_v61  ;;  %v1227_v3 = vand.u32 2147483647, %v1217_v61  ;;  %vm1223_vm7 = vweird.f32 %v1217_v61 }
0x13ae   : > { %2432 = vtanh.f32 %v1213_v58 }
0x13af   : > { %v1230_v5 = vor.u32 1.1754944e-38, %v1229_v1  ;;  %vm1228_vm9 = vcmp.eq.f32.partialorder %v1227_v3, 8.507059e+37 }
0x13b3   : > { %v2431_v62 = vpop.eup %2430 }
0x13b4   : > { %v1219_v63 = vmul.f32 %v2431_v62, %v1217_v61  ;;  %vm1224_vm6 = vweird.f32 %v2431_v62  ;;  %v2433_v7 = vpop.eup %2432 }
0x13b5   : > { %vm1225_vm8 = vmor %vm1223_vm7, %vm1224_vm6 }
0x13b6   : > { %v1220_v0 = vsub.f32 1.0, %v1219_v63 }
0x13b8   : > { %v1221_v2 = vmul.f32 %v2431_v62, %v1220_v0 }
0x13ba   : > { %v1222_v4 = vadd.f32 %v2431_v62, %v1221_v2 }
0x13bc   : > { %v1226_v6 = vsel %vm1225_vm8, %v2431_v62, %v1222_v4 }
0x13bd   : > { %v1231_v8 = vsel %vm1228_vm9, %v1230_v5, %v1226_v6 }
0x13be   : > { %v1234_v9 = vsel %vm631_vm3, %v1231_v8, %v2433_v7 }
0x13bf   : > { %1237 = vrot.lane.b32.xlu0 %v1234_v9, %s2621_s23  ;;  %v1235_v12 = vmul.f32 %v1234_v9, %v1176_v49 }
0x1431   : > { %v1238_v10 = vpop.permute.xlu0 %1237 }
0x1432   : > { %v1240_v11 = vmul.f32 %v1238_v10, %v1234_v9 }
0x1434   : > { %1242 = vrot.lane.b32.xlu1 %v1240_v11, %s2621_s23 }
0x14a6   : > { %v1243_v13 = vpop.permute.xlu1 %1242 }
0x14a7   : > { %v1245_v14 = vadd.f32 %v1243_v13, %v1235_v12 }
0x14a9   : > { %2434 = vtanh.f32 %v1245_v14 }
0x14af   : > { %v2435_v15 = vpop.eup %2434 }
0x14b0   : > { %1248 = vrot.lane.b32.xlu2 %v2435_v15, %s2621_s23 }
0x150a   : > { %v1249_v17 = vpop.permute.xlu2 %1248 }
0x150b   : > { %v1251_v19 = vmul.f32 %v1249_v17, %v1234_v9  ;;  %v486_v17 = vld [vmem:[%s2783_s14 + $0x58] sm:$0xff]  ;;  %s2090_s14 = scalar_lea.sflag [#allocation6], %s3360_s17 }
0x150c   : > { %2249 = vmatmul.msk.f32.gmra.mxu0 %vm499_vm0, %v486_v17  ;;  %v1764_v17 = vld [vmem:[%s3351_s4] sm:$0xff] }
0x150d   : > { %1253 = vrot.lane.b32.xlu0 %v1251_v19, %s2622_s28 }
0x157f   : > { %v1254_v21 = vpop.permute.xlu0 %1253 }
0x1580   : > { %1257 = vst.msk [vmem:[#allocation3 + $0x40] sm:$0xff] %vm499_vm0, %v1254_v21  ;;  %2272 = vmatmul.msk.f32.vlgmr.msra.gmra.mxu1 %vm499_vm0, %v1254_v21 }
0x1581   : > { %1688 = vmatpush.msra.mxu1 %v2765_v18 }
0x1583   : > { %1689 = vmatpush.msra.mxu1 %v2775_v20 }
0x1585   : > { %1690 = vmatpush.msra.mxu1 %v2789_v23 }
0x1587   : > { %1691 = vmatpush.msra.mxu1 %v2798_v25 }
0x1589   : > { %v598_v21 = vpop.f32.mrf.mxu0 }
0x15fd   : > { %v1279_v26 = vpop.f32.mrf.mxu1 }
0x15fe   : > { %v1282_v27 = vadd.f32 %v1279_v26, %v593_v24  ;;  %v599_v24 = vadd.f32 %v3019_v22, %v598_v21  ;;  %v1746_v21 = vld [vmem:[#allocation3 + $0x10] sm:$0xff] }
0x1600   : > { %v2273_v28 = vmul.f32 -1.442695, %v1282_v27 }
0x1602   : > { %2436 = vpow2.f32 %v2273_v28 }
0x1608   : > { %v2437_v29 = vpop.eup %2436 }
0x1609   : > { %v1286_v34 = vadd.f32 1.0, %v2437_v29 }
0x160b   : > { %2438 = vrcp.f32 %v1286_v34  ;;  %v1298_v18 = vand.u32 2147483648, %v1286_v34  ;;  %v1296_v23 = vand.u32 2147483647, %v1286_v34  ;;  %vm1292_vm11 = vweird.f32 %v1286_v34 }
0x160c   : > { %2440 = vtanh.f32 %v1282_v27 }
0x160d   : > { %v1299_v25 = vor.u32 1.1754944e-38, %v1298_v18  ;;  %vm1297_vm13 = vcmp.eq.f32.partialorder %v1296_v23, 8.507059e+37 }
0x1611   : > { %v2439_v36 = vpop.eup %2438 }
0x1612   : > { %v1288_v37 = vmul.f32 %v2439_v36, %v1286_v34  ;;  %vm1293_vm10 = vweird.f32 %v2439_v36  ;;  %v2441_v41 = vpop.eup %2440 }
0x1613   : > { %vm1294_vm12 = vmor %vm1292_vm11, %vm1293_vm10 }
0x1614   : > { %v1289_v38 = vsub.f32 1.0, %v1288_v37 }
0x1616   : > { %v1290_v20 = vmul.f32 %v2439_v36, %v1289_v38 }
0x1618   : > { %v1291_v39 = vadd.f32 %v2439_v36, %v1290_v20 }
0x161a   : > { %v1295_v40 = vsel %vm1294_vm12, %v2439_v36, %v1291_v39 }
0x161b   : > { %v1300_v42 = vsel %vm1297_vm13, %v1299_v25, %v1295_v40 }
0x161c   : > { %v1303_v43 = vsel %vm631_vm3, %v1300_v42, %v2441_v41 }
0x161d   : > { %1306 = vrot.lane.b32.xlu1 %v1303_v43, %s2621_s23  ;;  %v1304_v47 = vmul.f32 %v1303_v43, %v1245_v14 }
0x168f   : > { %v1307_v44 = vpop.permute.xlu1 %1306 }
0x1690   : > { %v1309_v45 = vmul.f32 %v1307_v44, %v1303_v43 }
0x1692   : > { %1311 = vrot.lane.b32.xlu2 %v1309_v45, %s2621_s23 }
0x16ec   : > { %v1312_v48 = vpop.permute.xlu2 %1311 }
0x16ed   : > { %v1314_v49 = vadd.f32 %v1312_v48, %v1304_v47 }
0x16ef   : > { %2442 = vtanh.f32 %v1314_v49 }
0x16f5   : > { %v2443_v50 = vpop.eup %2442 }
0x16f6   : > { %1317 = vrot.lane.b32.xlu0 %v2443_v50, %s2621_s23 }
0x1768   : > { %v1318_v51 = vpop.permute.xlu0 %1317 }
0x1769   : > { %v1320_v52 = vmul.f32 %v1318_v51, %v1303_v43 }
0x176b   : > { %1322 = vrot.lane.b32.xlu1 %v1320_v52, %s2622_s28 }
0x17dd   : > { %v1323_v54 = vpop.permute.xlu1 %1322 }
0x17de   : > { %1326 = vst.msk [vmem:[#allocation3 + $0x48] sm:$0xff] %vm499_vm0, %v1323_v54  ;;  %2274 = vmatmul.msk.f32.vlgmr.msrb.gmra.mxu2 %vm499_vm0, %v1323_v54  ;;  %v602_v54 = vadd.f32 %v3019_v22, %v2838_v30 }
0x1861   : > { %v1348_v57 = vpop.f32.mrf.mxu2 }
0x1862   : > { %v1351_v58 = vadd.f32 %v1348_v57, %v596_v56 }
0x1864   : > { %v2275_v59 = vmul.f32 -1.442695, %v1351_v58 }
0x1866   : > { %2444 = vpow2.f32 %v2275_v59 }
0x186c   : > { %v2445_v60 = vpop.eup %2444 }
0x186d   : > { %v1355_v61 = vadd.f32 1.0, %v2445_v60 }
0x186f   : > { %2446 = vrcp.f32 %v1355_v61  ;;  %v1367_v1 = vand.u32 2147483648, %v1355_v61  ;;  %v1365_v3 = vand.u32 2147483647, %v1355_v61  ;;  %vm1361_vm15 = vweird.f32 %v1355_v61 }
0x1870   : > { %2448 = vtanh.f32 %v1351_v58 }
0x1871   : > { %v1368_v5 = vor.u32 1.1754944e-38, %v1367_v1  ;;  %vm1366_vm2 = vcmp.eq.f32.partialorder %v1365_v3, 8.507059e+37 }
0x1875   : > { %v2447_v62 = vpop.eup %2446 }
0x1876   : > { %v1357_v63 = vmul.f32 %v2447_v62, %v1355_v61  ;;  %vm1362_vm14 = vweird.f32 %v2447_v62  ;;  %v2449_v6 = vpop.eup %2448 }
0x1877   : > { %vm1363_vm1 = vmor %vm1361_vm15, %vm1362_vm14 }
0x1878   : > { %v1358_v0 = vsub.f32 1.0, %v1357_v63 }
0x187a   : > { %v1359_v2 = vmul.f32 %v2447_v62, %v1358_v0 }
0x187c   : > { %v1360_v4 = vadd.f32 %v2447_v62, %v1359_v2 }
0x187e   : > { %v1364_v35 = vsel %vm1363_vm1, %v2447_v62, %v1360_v4 }
0x187f   : > { %v1369_v7 = vsel %vm1366_vm2, %v1368_v5, %v1364_v35 }
0x1880   : > { %v1372_v8 = vsel %vm631_vm3, %v1369_v7, %v2449_v6 }
0x1881   : > { %1375 = vrot.lane.b32.xlu2 %v1372_v8, %s2621_s23  ;;  %v1373_v11 = vmul.f32 %v1372_v8, %v1314_v49 }
0x18db   : > { %v1376_v9 = vpop.permute.xlu2 %1375 }
0x18dc   : > { %v1378_v10 = vmul.f32 %v1376_v9, %v1372_v8 }
0x18de   : > { %1380 = vrot.lane.b32.xlu0 %v1378_v10, %s2621_s23 }
0x1950   : > { %v1381_v12 = vpop.permute.xlu0 %1380 }
0x1951   : > { %v1383_v13 = vadd.f32 %v1381_v12, %v1373_v11 }
0x1953   : > { %2450 = vtanh.f32 %v1383_v13 }
0x1959   : > { %v2451_v14 = vpop.eup %2450 }
0x195a   : > { %1386 = vrot.lane.b32.xlu1 %v2451_v14, %s2621_s23  ;;  %v1767_v14 = vld [vmem:[%s3351_s4 + $0x18] sm:$0xff] }
0x195b   : > { %2310 = vmatpush.msrb.mxu2 %v1767_v14 }
0x19cc   : > { %v1387_v15 = vpop.permute.xlu1 %1386 }
0x19cd   : > { %v1389_v16 = vmul.f32 %v1387_v15, %v1372_v8  ;;  %v1766_v15 = vld [vmem:[%s3351_s4 + $0x10] sm:$0xff] }
0x19ce   : > { %2312 = vmatpush.msrb.mxu2 %v1766_v15 }
0x19cf   : > { %1391 = vrot.lane.b32.xlu2 %v1389_v16, %s2622_s28  ;;  %v1765_v16 = vld [vmem:[%s3351_s4 + $0x8] sm:$0xff] }
0x19d0   : > { %2314 = vmatpush.msrb.mxu2 %v1765_v16 }
0x19d2   : > { %2316 = vmatpush.msrb.mxu2 %v1764_v17 }
0x1a29   : > { %v1392_v19 = vpop.permute.xlu2 %1391 }
0x1a2a   : > { %1395 = vst.msk [vmem:[#allocation3 + $0x50] sm:$0xff] %vm499_vm0, %v1392_v19  ;;  %2276 = vmatmul.msk.f32.vlgmr.msrb.gmra.mxu3 %vm499_vm0, %v1392_v19 }
0x1a2b   : > { %2311 = vmatpush.msrb.mxu3 %v1767_v14 }
0x1a2d   : > { %2313 = vmatpush.msrb.mxu3 %v1766_v15 }
0x1a2f   : > { %2315 = vmatpush.msrb.mxu3 %v1765_v16 }
0x1a31   : > { %2317 = vmatpush.msrb.mxu3 %v1764_v17 }
0x1aad   : > { %v1417_v26 = vpop.f32.mrf.mxu3 }
0x1aae   : > { %v1420_v27 = vadd.f32 %v1417_v26, %v599_v24  ;;  %v1747_v24 = vld [vmem:[#allocation3 + $0x18] sm:$0xff]  ;;  %v1748_v26 = vld [vmem:[#allocation3 + $0x20] sm:$0xff] }
0x1ab0   : > { %v2277_v28 = vmul.f32 -1.442695, %v1420_v27 }
0x1ab2   : > { %2452 = vpow2.f32 %v2277_v28  ;;  %v1750_v28 = vld [vmem:[#allocation3 + $0x30] sm:$0xff] }
0x1ab8   : > { %v2453_v29 = vpop.eup %2452 }
0x1ab9   : > { %v1424_v34 = vadd.f32 1.0, %v2453_v29  ;;  %v1751_v29 = vld [vmem:[#allocation3 + $0x38] sm:$0xff] }
0x1abb   : > { %2454 = vrcp.f32 %v1424_v34  ;;  %v1436_v18 = vand.u32 2147483648, %v1424_v34  ;;  %v1434_v23 = vand.u32 2147483647, %v1424_v34  ;;  %vm1430_vm5 = vweird.f32 %v1424_v34 }
0x1abc   : > { %2456 = vtanh.f32 %v1420_v27  ;;  %v1749_v27 = vld [vmem:[#allocation3 + $0x28] sm:$0xff] }
0x1abd   : > { %v1437_v25 = vor.u32 1.1754944e-38, %v1436_v18  ;;  %vm1435_vm7 = vcmp.eq.f32.partialorder %v1434_v23, 8.507059e+37 }
0x1ac1   : > { %v2455_v36 = vpop.eup %2454 }
0x1ac2   : > { %v1426_v37 = vmul.f32 %v2455_v36, %v1424_v34  ;;  %vm1431_vm4 = vweird.f32 %v2455_v36  ;;  %v2457_v41 = vpop.eup %2456  ;;  %v1752_v34 = vld [vmem:[#allocation3 + $0x40] sm:$0xff] }
0x1ac3   : > { %vm1432_vm6 = vmor %vm1430_vm5, %vm1431_vm4 }
0x1ac4   : > { %v1427_v38 = vsub.f32 1.0, %v1426_v37 }
0x1ac6   : > { %v1428_v20 = vmul.f32 %v2455_v36, %v1427_v38 }
0x1ac8   : > { %v1429_v39 = vadd.f32 %v2455_v36, %v1428_v20 }
0x1aca   : > { %v1433_v40 = vsel %vm1432_vm6, %v2455_v36, %v1429_v39  ;;  %v605_v36 = vadd.f32 %v3019_v22, %v2840_v31 }
0x1acb   : > { %v1438_v42 = vsel %vm1435_vm7, %v1437_v25, %v1433_v40 }
0x1acc   : > { %v1441_v43 = vsel %vm631_vm3, %v1438_v42, %v2457_v41 }
0x1acd   : > { %1444 = vrot.lane.b32.xlu0 %v1441_v43, %s2621_s23  ;;  %v1442_v47 = vmul.f32 %v1441_v43, %v1383_v13 }
0x1b3f   : > { %v1445_v44 = vpop.permute.xlu0 %1444 }
0x1b40   : > { %v1447_v45 = vmul.f32 %v1445_v44, %v1441_v43 }
0x1b42   : > { %1449 = vrot.lane.b32.xlu1 %v1447_v45, %s2621_s23 }
0x1bb4   : > { %v1450_v48 = vpop.permute.xlu1 %1449 }
0x1bb5   : > { %v1452_v49 = vadd.f32 %v1450_v48, %v1442_v47 }
0x1bb7   : > { %2458 = vtanh.f32 %v1452_v49 }
0x1bbd   : > { %v2459_v50 = vpop.eup %2458 }
0x1bbe   : > { %1455 = vrot.lane.b32.xlu2 %v2459_v50, %s2621_s23 }
0x1c18   : > { %v1456_v51 = vpop.permute.xlu2 %1455 }
0x1c19   : > { %v1458_v52 = vmul.f32 %v1456_v51, %v1441_v43 }
0x1c1b   : > { %1460 = vrot.lane.b32.xlu0 %v1458_v52, %s2622_s28 }
0x1c8d   : > { %v1461_v53 = vpop.permute.xlu0 %1460 }
0x1c8e   : > { %1464 = vst.msk [vmem:[#allocation3 + $0x58] sm:$0xff] %vm499_vm0, %v1461_v53  ;;  %2278 = vmatmul.msk.f32.vlgmr.msrb.gmra.mxu1 %vm499_vm0, %v1461_v53 }
0x1c8f   : > { %1828 = vmatpush.msrb.mxu1 %v1767_v14 }
0x1c91   : > { %1829 = vmatpush.msrb.mxu1 %v1766_v15 }
0x1c93   : > { %1830 = vmatpush.msrb.mxu1 %v1765_v16 }
0x1c95   : > { %1831 = vmatpush.msrb.mxu1 %v1764_v17 }
0x1d0b   : > { %v1486_v55 = vpop.f32.mrf.mxu1 }
0x1d0c   : > { %v1489_v56 = vadd.f32 %v1486_v55, %v602_v54 }
0x1d0e   : > { %v2279_v57 = vmul.f32 -1.442695, %v1489_v56 }
0x1d10   : > { %2460 = vpow2.f32 %v2279_v57 }
0x1d16   : > { %v2461_v58 = vpop.eup %2460 }
0x1d17   : > { %v1493_v59 = vadd.f32 1.0, %v2461_v58 }
0x1d19   : > { %2462 = vrcp.f32 %v1493_v59  ;;  %v1505_v63 = vand.u32 2147483648, %v1493_v59  ;;  %v1503_v1 = vand.u32 2147483647, %v1493_v59  ;;  %vm1499_vm9 = vweird.f32 %v1493_v59 }
0x1d1a   : > { %2464 = vtanh.f32 %v1489_v56 }
0x1d1b   : > { %v1506_v3 = vor.u32 1.1754944e-38, %v1505_v63  ;;  %vm1504_vm11 = vcmp.eq.f32.partialorder %v1503_v1, 8.507059e+37 }
0x1d1f   : > { %v2463_v60 = vpop.eup %2462 }
0x1d20   : > { %v1495_v61 = vmul.f32 %v2463_v60, %v1493_v59  ;;  %vm1500_vm8 = vweird.f32 %v2463_v60  ;;  %v2465_v4 = vpop.eup %2464  ;;  %v1753_v59 = vld [vmem:[#allocation3 + $0x48] sm:$0xff] }
0x1d21   : > { %vm1501_vm10 = vmor %vm1499_vm9, %vm1500_vm8 }
0x1d22   : > { %v1496_v62 = vsub.f32 1.0, %v1495_v61  ;;  %v1755_v61 = vld [vmem:[#allocation3 + $0x58] sm:$0xff] }
0x1d24   : > { %v1497_v0 = vmul.f32 %v2463_v60, %v1496_v62 }
0x1d26   : > { %v1498_v2 = vadd.f32 %v2463_v60, %v1497_v0  ;;  %v608_v0 = vadd.f32 %v3019_v22, %v2842_v32 }
0x1d28   : > { %v1502_v30 = vsel %vm1501_vm10, %v2463_v60, %v1498_v2  ;;  %v1754_v60 = vld [vmem:[#allocation3 + $0x50] sm:$0xff] }
0x1d29   : > { %v1507_v5 = vsel %vm1504_vm11, %v1506_v3, %v1502_v30 }
0x1d2a   : > { %v1510_v35 = vsel %vm631_vm3, %v1507_v5, %v2465_v4 }
0x1d2b   : > { %1513 = vrot.lane.b32.xlu1 %v1510_v35, %s2621_s23  ;;  %v1511_v8 = vmul.f32 %v1510_v35, %v1452_v49 }
0x1d9d   : > { %v1514_v6 = vpop.permute.xlu1 %1513 }
0x1d9e   : > { %v1516_v7 = vmul.f32 %v1514_v6, %v1510_v35 }
0x1da0   : > { %1518 = vrot.lane.b32.xlu2 %v1516_v7, %s2621_s23 }
0x1dfa   : > { %v1519_v9 = vpop.permute.xlu2 %1518 }
0x1dfb   : > { %v3036_v10 = vadd.f32 %v1519_v9, %v1511_v8 }
0x1dfd   : > { %2466 = vtanh.f32 %v3036_v10 }
0x1e03   : > { %v2467_v11 = vpop.eup %2466 }
0x1e04   : > { %1524 = vrot.lane.b32.xlu0 %v2467_v11, %s2621_s23 }
0x1e76   : > { %v1525_v12 = vpop.permute.xlu0 %1524 }
0x1e77   : > { %v1527_v13 = vmul.f32 %v1525_v12, %v1510_v35 }
0x1e79   : > { %1529 = vrot.lane.b32.xlu1 %v1527_v13, %s2622_s28 }
0x1eeb   : > { %v1530_v19 = vpop.permute.xlu1 %1529 }
0x1eec   : > { %1533 = vst.msk [vmem:[#allocation3 + $0x60] sm:$0xff] %vm499_vm0, %v1530_v19  ;;  %2280 = vmatmul.msk.f32.vlgmr.msra.gmra.mxu2 %vm499_vm0, %v1530_v19 }
0x1ef3   : > { %v1756_v62 = vld [vmem:[#allocation3 + $0x60] sm:$0xff] }
0x1ef4   : > { %2288 = vmatmul.msk.f32.vlgmr.msrb.gmra.mxu2 %vm499_vm0, %v1746_v21 }
0x1efc   : > { %2289 = vmatmul.msk.f32.gmra.mxu2 %vm499_vm0, %v1747_v24 }
0x1f04   : > { %2290 = vmatmul.msk.f32.gmra.mxu2 %vm499_vm0, %v1748_v26 }
0x1f0c   : > { %2291 = vmatmul.msk.f32.gmra.mxu2 %vm499_vm0, %v1749_v27 }
0x1f14   : > { %2292 = vmatmul.msk.f32.gmra.mxu2 %vm499_vm0, %v1750_v28 }
0x1f1c   : > { %2293 = vmatmul.msk.f32.gmra.mxu2 %vm499_vm0, %v1751_v29  ;;  %v1744_v29 = vld [vmem:[#allocation3] sm:$0xff] }
0x1f24   : > { %2294 = vmatmul.msk.f32.gmra.mxu2 %vm499_vm0, %v1752_v34 }
0x1f6f   : > { %v1555_v37 = vpop.f32.mrf.mxu2 }
0x1f70   : > { %v1558_v38 = vadd.f32 %v1555_v37, %v605_v36  ;;  %v1745_v36 = vld [vmem:[#allocation3 + $0x8] sm:$0xff]  ;;  %v611_v37 = vadd.f32 %v3019_v22, %v2844_v33 }
0x1f72   : > { %v2281_v18 = vmul.f32 -1.442695, %v1558_v38 }
0x1f74   : > { %2468 = vpow2.f32 %v2281_v18 }
0x1f7a   : > { %v2469_v20 = vpop.eup %2468 }
0x1f7b   : > { %v1562_v23 = vadd.f32 1.0, %v2469_v20 }
0x1f7d   : > { %2470 = vrcp.f32 %v1562_v23  ;;  %v1574_v41 = vand.u32 2147483648, %v1562_v23  ;;  %v1572_v43 = vand.u32 2147483647, %v1562_v23  ;;  %vm1568_vm13 = vweird.f32 %v1562_v23 }
0x1f7e   : > { %2472 = vtanh.f32 %v1558_v38 }
0x1f7f   : > { %v1575_v45 = vor.u32 1.1754944e-38, %v1574_v41  ;;  %vm1573_vm15 = vcmp.eq.f32.partialorder %v1572_v43, 8.507059e+37 }
0x1f83   : > { %v2471_v39 = vpop.eup %2470 }
0x1f84   : > { %v1564_v25 = vmul.f32 %v2471_v39, %v1562_v23  ;;  %vm1569_vm12 = vweird.f32 %v2471_v39  ;;  %v2473_v47 = vpop.eup %2472 }
0x1f85   : > { %vm1570_vm14 = vmor %vm1568_vm13, %vm1569_vm12 }
0x1f86   : > { %v1565_v40 = vsub.f32 1.0, %v1564_v25 }
0x1f88   : > { %v1566_v42 = vmul.f32 %v2471_v39, %v1565_v40 }
0x1f8a   : > { %v1567_v44 = vadd.f32 %v2471_v39, %v1566_v42 }
0x1f8c   : > { %v1571_v31 = vsel %vm1570_vm14, %v2471_v39, %v1567_v44 }
0x1f8d   : > { %v1576_v48 = vsel %vm1573_vm15, %v1575_v45, %v1571_v31 }
0x1f8e   : > { %v1579_v49 = vsel %vm631_vm3, %v1576_v48, %v2473_v47 }
0x1f8f   : > { %1582 = vrot.lane.b32.xlu2 %v1579_v49, %s2621_s23  ;;  %v1580_v52 = vmul.f32 %v1579_v49, %v3036_v10 }
0x1fe9   : > { %v1583_v50 = vpop.permute.xlu2 %1582 }
0x1fea   : > { %v1585_v51 = vmul.f32 %v1583_v50, %v1579_v49 }
0x1fec   : > { %1587 = vrot.lane.b32.xlu0 %v1585_v51, %s2621_s23  ;;  %v3104_v51 = vpop.f32.mrf.mxu2 }
0x205e   : > { %v1588_v53 = vpop.permute.xlu0 %1587 }
0x205f   : > { %v1590_v54 = vadd.f32 %v1588_v53, %v1580_v52  ;;  %v1842_v52 = vpop.f32.mrf.mxu2 }
0x2061   : > { %2474 = vtanh.f32 %v1590_v54 }
0x2067   : > { %v2475_v55 = vpop.eup %2474  ;;  %v1845_v53 = vpop.f32.mrf.mxu2 }
0x2068   : > { %1593 = vrot.lane.b32.xlu1 %v2475_v55, %s2621_s23 }
0x20da   : > { %v1594_v56 = vpop.permute.xlu1 %1593 }
0x20db   : > { %v1596_v57 = vmul.f32 %v1594_v56, %v1579_v49 }
0x20dd   : > { %1598 = vrot.lane.b32.xlu2 %v1596_v57, %s2622_s28  ;;  %v1848_v57 = vpop.f32.mrf.mxu2 }
0x2137   : > { %v1599_v58 = vpop.permute.xlu2 %1598 }
0x2138   : > { %1602 = vst.msk [vmem:[#allocation3 + $0x68] sm:$0xff] %vm499_vm0, %v1599_v58  ;;  %2282 = vmatmul.msk.f32.vlgmr.msra.gmra.mxu3 %vm499_vm0, %v1599_v58 }
0x213f   : > { %v1757_v63 = vld [vmem:[#allocation3 + $0x68] sm:$0xff] }
0x2140   : > { %2295 = vmatmul.msk.f32.vlgmr.msrb.gmra.mxu3 %vm499_vm0, %v1753_v59 }
0x2148   : > { %2296 = vmatmul.msk.f32.gmra.mxu3 %vm499_vm0, %v1754_v60  ;;  %v1843_v60 = vadd.f32 %v3111_v46, %v1842_v52 }
0x2150   : > { %2297 = vmatmul.msk.f32.gmra.mxu3 %vm499_vm0, %v1755_v61  ;;  %v3118_v61 = vpop.f32.mrf.mxu2 }
0x2158   : > { %2298 = vmatmul.msk.f32.gmra.mxu3 %vm499_vm0, %v1756_v62  ;;  %v3120_v62 = vmax.f32 %v1843_v60, 0.0 }
0x2160   : > { %2299 = vmatmul.msk.f32.gmra.mxu3 %vm499_vm0, %v1757_v63  ;;  %v1846_v63 = vadd.f32 %v3111_v46, %v1845_v53 }
0x21bb   : > { %v1624_v1 = vpop.f32.mrf.mxu3 }
0x21bc   : > { %v1627_v2 = vadd.f32 %v1624_v1, %v608_v0  ;;  %v3124_v1 = vmax.f32 %v1846_v63, 0.0 }
0x21be   : > { %v2283_v3 = vmul.f32 -1.442695, %v1627_v2 }
0x21c0   : > { %2476 = vpow2.f32 %v2283_v3 }
0x21c6   : > { %v2477_v30 = vpop.eup %2476 }
0x21c7   : > { %v1631_v4 = vadd.f32 1.0, %v2477_v30 }
0x21c9   : > { %2478 = vrcp.f32 %v1631_v4  ;;  %v1643_v7 = vand.u32 2147483648, %v1631_v4  ;;  %v1641_v9 = vand.u32 2147483647, %v1631_v4  ;;  %vm1637_vm2 = vweird.f32 %v1631_v4 }
0x21ca   : > { %2480 = vtanh.f32 %v1627_v2  ;;  %v1854_v2 = vpop.f32.mrf.mxu2 }
0x21cb   : > { %v1644_v11 = vor.u32 1.1754944e-38, %v1643_v7  ;;  %vm1642_vm5 = vcmp.eq.f32.partialorder %v1641_v9, 8.507059e+37  ;;  %v1855_v3 = vadd.f32 %v3111_v46, %v1854_v2 }
0x21cf   : > { %v2479_v5 = vpop.eup %2478 }
0x21d0   : > { %v1633_v35 = vmul.f32 %v2479_v5, %v1631_v4  ;;  %vm1638_vm1 = vweird.f32 %v2479_v5  ;;  %v2481_v12 = vpop.eup %2480  ;;  %v3130_v4 = vmax.f32 %v1855_v3, 0.0 }
0x21d1   : > { %vm1639_vm4 = vmor %vm1637_vm2, %vm1638_vm1 }
0x21d2   : > { %v1634_v6 = vsub.f32 1.0, %v1633_v35 }
0x21d4   : > { %v1635_v8 = vmul.f32 %v2479_v5, %v1634_v6 }
0x21d6   : > { %v1636_v10 = vadd.f32 %v2479_v5, %v1635_v8 }
0x21d8   : > { %v1640_v32 = vsel %vm1639_vm4, %v2479_v5, %v1636_v10 }
0x21d9   : > { %v1645_v13 = vsel %vm1642_vm5, %v1644_v11, %v1640_v32 }
0x21da   : > { %v1648_v14 = vsel %vm631_vm3, %v1645_v13, %v2481_v12 }
0x21db   : > { %1651 = vrot.lane.b32.xlu0 %v1648_v14, %s2621_s23  ;;  %v1649_v17 = vmul.f32 %v1648_v14, %v1590_v54  ;;  %v3106_v54 = vpop.f32.mrf.mxu3 }
0x21dc   : > { %v1861_v52 = vadd.f32 %v3111_v46, %v3106_v54 }
0x21e3   : > { %v1863_v59 = vpop.f32.mrf.mxu3 }
0x21e4   : > { %v1864_v5 = vadd.f32 %v3111_v46, %v1863_v59 }
0x21e6   : > { %v3134_v35 = vmax.f32 %v1864_v5, 0.0 }
0x21eb   : > { %v1866_v0 = vpop.f32.mrf.mxu3 }
0x21f3   : > { %v3128_v30 = vpop.f32.mrf.mxu3 }
0x21f4   : > { %v1870_v60 = vadd.f32 %v3111_v46, %v3128_v30 }
0x21fb   : > { %v1872_v6 = vpop.f32.mrf.mxu3 }
0x21fc   : > { %v1873_v7 = vadd.f32 %v3111_v46, %v1872_v6 }
0x21fe   : > { %v3138_v8 = vmax.f32 %v1873_v7, 0.0 }
0x224d   : > { %v1652_v15 = vpop.permute.xlu0 %1651 }
0x224e   : > { %v1654_v16 = vmul.f32 %v1652_v15, %v1648_v14  ;;  %v1849_v15 = vadd.f32 %v3111_v46, %v1848_v57 }
0x2250   : > { %1656 = vrot.lane.b32.xlu1 %v1654_v16, %s2621_s23  ;;  %v3152_v16 = vmax.f32 %v1849_v15, 0.0 }
0x22c2   : > { %v1657_v19 = vpop.permute.xlu1 %1656 }
0x22c3   : > { %v3084_v21 = vadd.f32 %v1657_v19, %v1649_v17  ;;  %v1857_v17 = vpop.f32.mrf.mxu2 }
0x22c4   : > { %v1858_v19 = vadd.f32 %v3111_v46, %v1857_v17 }
0x22c5   : > { %2482 = vtanh.f32 %v3084_v21 }
0x22cb   : > { %v2483_v24 = vpop.eup %2482 }
0x22cc   : > { %1662 = vrot.lane.b32.xlu2 %v2483_v24, %s2621_s23 }
0x2326   : > { %v1663_v26 = vpop.permute.xlu2 %1662 }
0x2327   : > { %v1665_v27 = vmul.f32 %v1663_v26, %v1648_v14 }
0x2329   : > { %1667 = vrot.lane.b32.xlu0 %v1665_v27, %s2622_s28 }
0x239b   : > { %v1668_v28 = vpop.permute.xlu0 %1667 }
0x239c   : > { %1671 = vst.msk [vmem:[#allocation3 + $0x70] sm:$0xff] %vm499_vm0, %v1668_v28  ;;  %2284 = vmatmul.msk.f32.vlgmr.msra.gmra.mxu1 %vm499_vm0, %v1668_v28  ;;  %v1867_v28 = vadd.f32 %v3111_v46, %v1866_v0 }
0x23a3   : > { %v1758_v34 = vld [vmem:[#allocation3 + $0x70] sm:$0xff] }
0x23a4   : > { %2286 = vmatmul.msk.f32.vlgmr.msrb.gmra.mxu1 %vm499_vm0, %v1744_v29  ;;  %2300 = vmatmul.msk.f32.gmra.mxu3 %vm499_vm0, %v1758_v34  ;;  %v3164_v29 = vmax.f32 %v1867_v28, 0.0 }
0x23ac   : > { %2287 = vmatmul.msk.f32.gmra.mxu1 %vm499_vm0, %v1745_v36 }
0x2419   : > { %v1693_v38 = vpop.f32.mrf.mxu1 }
0x241a   : > { %v1696_v18 = vadd.f32 %v1693_v38, %v611_v37 }
0x241c   : > { %v2285_v20 = vmul.f32 -1.442695, %v1696_v18 }
0x241e   : > { %2484 = vpow2.f32 %v2285_v20 }
0x2421   : > { %v1833_v55 = vpop.f32.mrf.mxu1 }
0x2422   : > { %v1834_v56 = vadd.f32 %v3111_v46, %v1833_v55  ;;  %v3203_v55 = vmax.f32 %v1861_v52, 0.0 }
0x2424   : > { %v2485_v23 = vpop.eup %2484  ;;  %v3114_v58 = vmax.f32 %v1834_v56, 0.0 }
0x2425   : > { %v1700_v39 = vadd.f32 1.0, %v2485_v23 }
0x2427   : > { %2486 = vrcp.f32 %v1700_v39  ;;  %v1712_v42 = vand.u32 2147483648, %v1700_v39  ;;  %v1710_v44 = vand.u32 2147483647, %v1700_v39  ;;  %vm1706_vm7 = vweird.f32 %v1700_v39  ;;  %v1875_v36 = vpop.f32.mrf.mxu3 }
0x2428   : > { %2488 = vtanh.f32 %v1696_v18  ;;  %v1876_v20 = vadd.f32 %v3111_v46, %v1875_v36 }
0x2429   : > { %v1713_v31 = vor.u32 1.1754944e-38, %v1712_v42  ;;  %vm1711_vm9 = vcmp.eq.f32.partialorder %v1710_v44, 8.507059e+37  ;;  %v1836_v12 = vpop.f32.mrf.mxu1  ;;  %v1840_v42 = vadd.f32 %v3111_v46, %v3104_v51 }
0x242a   : > { %v1837_v13 = vadd.f32 %v3111_v46, %v1836_v12  ;;  %v3172_v23 = vmax.f32 %v1876_v20, 0.0 }
0x242b   : > { %v3183_v44 = vmax.f32 %v1840_v42, 0.0 }
0x242c   : > { %v3148_v14 = vmax.f32 %v1837_v13, 0.0 }
0x242d   : > { %v2487_v25 = vpop.eup %2486 }
0x242e   : > { %v1702_v40 = vmul.f32 %v2487_v25, %v1700_v39  ;;  %vm1707_vm6 = vweird.f32 %v2487_v25  ;;  %v2489_v22 = vpop.eup %2488 }
0x242f   : > { %vm1708_vm8 = vmor %vm1706_vm7, %vm1707_vm6 }
0x2430   : > { %v1703_v41 = vsub.f32 1.0, %v1702_v40 }
0x2432   : > { %v1704_v43 = vmul.f32 %v2487_v25, %v1703_v41 }
0x2434   : > { %v1705_v45 = vadd.f32 %v2487_v25, %v1704_v43 }
0x2436   : > { %v1709_v33 = vsel %vm1708_vm8, %v2487_v25, %v1705_v45 }
0x2437   : > { %v1714_v47 = vsel %vm1711_vm9, %v1713_v31, %v1709_v33 }
0x2438   : > { %v3098_v48 = vsel %vm631_vm3, %v1714_v47, %v2489_v22  ;;  %v1852_v22 = vadd.f32 %v3111_v46, %v3118_v61  ;;  %v3212_v61 = vmax.f32 %v1870_v60, 0.0  ;;  %vm1742_vm3 = vcmask 523264  }
0x2439   : > { %1720 = vrot.lane.b32.xlu1 %v3098_v48, %s2621_s23  ;;  %v1718_v9 = vmul.f32 %v3098_v48, %v3084_v21  ;;  %v3156_v21 = vmax.f32 %v1858_v19, 0.0 }
0x24ab   : > { %v1721_v49 = vpop.permute.xlu1 %1720 }
0x24ac   : > { %v1723_v50 = vmul.f32 %v1721_v49, %v3098_v48 }
0x24ae   : > { %1725 = vrot.lane.b32.xlu2 %v1723_v50, %s2621_s23 }
0x24d7   : > { %1897 = vmax.xlane.f32.xlu2 %v3114_v58 }
0x24df   : > { %1903 = vmax.xlane.f32.xlu2 %v3120_v62 }
0x24e7   : > { %1905 = vmax.xlane.f32.xlu2 %v3124_v1 }
0x24ef   : > { %1911 = vmax.xlane.f32.xlu2 %v3130_v4 }
0x24f7   : > { %1917 = vmax.xlane.f32.xlu2 %v3134_v35 }
0x24ff   : > { %1923 = vmax.xlane.f32.xlu2 %v3138_v8 }
0x2508   : > { %v1726_v10 = vpop.permute.xlu2 %1725 }
0x2509   : > { %v3143_v11 = vadd.f32 %v1726_v10, %v1718_v9 }
0x250b   : > { %2490 = vtanh.f32 %v3143_v11 }
0x2511   : > { %v2491_v32 = vpop.eup %2490 }
0x2512   : > { %1731 = vrot.lane.b32.xlu0 %v2491_v32, %s2621_s23  ;;  %s3220_s23 = scalar_lea.vmem [#allocation5], %s2760_s21  ;;  %s2303_s21 = sshll.u32 %s2697_s13, 3 }
0x2513   : > { %s2104_s27 = scalar_lea.hbm %s3355_s8, %s2303_s21  ;;  %s2105_s29 = sshll.u32 %s3220_s23, 4  ;;  %s2106_s29 = int_to_ptr.vmem [resolvable:$true] %s2105_s29 }
0x2514   : > { %s2107_s16 = sshll.u32 %s2104_s27, 4  ;;  %s2577_s21 = scalar_lea.hbm %s3355_s8, 256  ;;  %s2108_s16 = int_to_ptr.hbm [resolvable:$true] %s2107_s16 }
0x253c   : > { %1899 = vmax.xlane.f32.xlu0 %v3148_v14 }
0x2544   : > { %1907 = vmax.xlane.f32.xlu0 %v3152_v16 }
0x254a   : > { %v3158_v24 = vpop.xlane.xlu2 %1897 }
0x254b   : > { %v1929_v26 = vsub.f32 %v3114_v58, %v3158_v24 }
0x254c   : > { %1913 = vmax.xlane.f32.xlu0 %v3156_v21 }
0x254d   : > { %v1945_v27 = vmul.f32 1.442695, %v1929_v26 }
0x254f   : > { %2492 = vpow2.f32 %v1945_v27 }
0x2552   : > { %v3166_v34 = vpop.xlane.xlu2 %1903 }
0x2553   : > { %v1932_v37 = vsub.f32 %v3120_v62, %v3166_v34 }
0x2554   : > { %1919 = vmax.xlane.f32.xlu0 %v3164_v29 }
0x2555   : > { %v2493_v38 = vpop.eup %2492  ;;  %v1951_v18 = vmul.f32 1.442695, %v1932_v37 }
0x2556   : > { %1977 = vadd.xlane.f32.xlu2 %v2493_v38 }
0x2557   : > { %2494 = vpow2.f32 %v1951_v18 }
0x255a   : > { %v3177_v41 = vpop.xlane.xlu2 %1905 }
0x255b   : > { %v1933_v47 = vsub.f32 %v3124_v1, %v3177_v41 }
0x255c   : > { %1925 = vmax.xlane.f32.xlu0 %v3172_v23 }
0x255d   : > { %v2495_v39 = vpop.eup %2494  ;;  %v1953_v50 = vmul.f32 1.442695, %v1933_v47 }
0x255e   : > { %1983 = vadd.xlane.f32.xlu2 %v2495_v39 }
0x2562   : > { %v3181_v43 = vpop.xlane.xlu2 %1911 }
0x2563   : > { %v1936_v53 = vsub.f32 %v3130_v4, %v3181_v43 }
0x2565   : > { %v1959_v56 = vmul.f32 1.442695, %v1936_v53 }
0x256a   : > { %v3196_v49 = vpop.xlane.xlu2 %1917 }
0x256b   : > { %v1939_v54 = vsub.f32 %v3134_v35, %v3196_v49 }
0x256d   : > { %v1965_v63 = vmul.f32 1.442695, %v1939_v54 }
0x2572   : > { %v3205_v57 = vpop.xlane.xlu2 %1923 }
0x2573   : > { %v1942_v3 = vsub.f32 %v3138_v8, %v3205_v57 }
0x2575   : > { %v1971_v5 = vmul.f32 1.442695, %v1942_v3 }
0x2584   : > { %v1732_v25 = vpop.permute.xlu0 %1731 }
0x2585   : > { %v1734_v40 = vmul.f32 %v1732_v25, %v3098_v48  ;;  %v3194_v48 = vmax.f32 %v1852_v22, 0.0 }
0x2587   : > { %1736 = vrot.lane.b32.xlu1 %v1734_v40, %s2622_s28  ;;  %s2571_s28 = sshra.s32 %s2108_s16, 4  ;;  %s2572_s28 = int_to_ptr.hbm [resolvable:$true] %s2571_s28 }
0x2588   : > { %s2573_s13 = scalar_lea.hbm %s2572_s28, 128  ;;  %p2578_p3 = scmp.lt.s32.totalorder %s2572_s28, %s3355_s8 }
0x2589   : > { %p2574_p0 = scmp.ne.s32.totalorder %s2572_s28, %s2573_s13  ;;  %p2579_p4 = scmp.lt.s32.totalorder %s2577_s21, %s2573_s13 }
0x258b   : > { %p2575_p1 = pnand %p2574_p0, %p2715_p6  ;;  %p2580_p5 = por %p2579_p4, %p2578_p3 }
0x258d   : > { %p2576_p2 = pneg %p2575_p1 }
0x258f   : > { %p2581_p7 = pnand %p2580_p5, %p2576_p2 }
0x25af   : > { %v3185_v45 = vpop.xlane.xlu0 %1899 }
0x25b0   : > { %v1930_v31 = vsub.f32 %v3148_v14, %v3185_v45 }
0x25b1   : > { %1901 = vmax.xlane.f32.xlu1 %v3183_v44 }
0x25b2   : > { %v1947_v33 = vmul.f32 1.442695, %v1930_v31 }
0x25b4   : > { %2496 = vpow2.f32 %v1947_v33 }
0x25b5   : > { %2498 = vpow2.f32 %v1953_v50 }
0x25b6   : > { %2500 = vpow2.f32 %v1959_v56 }
0x25b7   : > { %v3234_v27 = vpop.xlane.xlu0 %1907 }
0x25b9   : > { %1909 = vmax.xlane.f32.xlu1 %v3194_v48 }
0x25ba   : > { %v2497_v51 = vpop.eup %2496 }
0x25bb   : > { %1979 = vadd.xlane.f32.xlu0 %v2497_v51  ;;  %v2499_v59 = vpop.eup %2498 }
0x25bc   : > { %v2501_v2 = vpop.eup %2500 }
0x25bf   : > { %v3236_v28 = vpop.xlane.xlu0 %1913 }
0x25c1   : > { %1915 = vmax.xlane.f32.xlu1 %v3203_v55 }
0x25c3   : > { %1985 = vadd.xlane.f32.xlu0 %v2499_v59 }
0x25c9   : > { %1921 = vmax.xlane.f32.xlu1 %v3212_v61  ;;  %v1978_v0 = vpop.xlane.xlu2 %1977 }
0x25ca   : > { %2502 = vlog2.f32 %v1978_v0 }
0x25cb   : > { %1991 = vadd.xlane.f32.xlu0 %v2501_v2  ;;  %2504 = vpow2.f32 %v1965_v63 }
0x25d0   : > { %v2503_v30 = vpop.eup %2502 }
0x25d1   : > { %v2010_v6 = vmul.f32 0.6931472, %v2503_v30  ;;  %v1984_v7 = vpop.xlane.xlu2 %1983  ;;  %v2505_v9 = vpop.eup %2504 }
0x25d2   : > { %2506 = vlog2.f32 %v1984_v7 }
0x25d3   : > { %v2041_v10 = vadd.f32 %v2010_v6, %v3158_v24  ;;  %1997 = vadd.xlane.f32.xlu0 %v2505_v9  ;;  %2508 = vpow2.f32 %v1971_v5 }
0x25d5   : > { %v2057_v32 = vsub.f32 %v3114_v58, %v2041_v10 }
0x25d7   : > { %2073 = vst [vmem:[%s3220_s23] sm:$0xff] %v2057_v32 }
0x25d8   : > { %v2507_v12 = vpop.eup %2506 }
0x25d9   : > { %v2016_v13 = vmul.f32 0.6931472, %v2507_v12  ;;  %v2509_v15 = vpop.eup %2508 }
0x25db   : > { %v2044_v17 = vadd.f32 %v2016_v13, %v3166_v34  ;;  %2003 = vadd.xlane.f32.xlu0 %v2509_v15 }
0x25dd   : > { %v2060_v19 = vsub.f32 %v3120_v62, %v2044_v17  ;;  %v3238_v62 = vpop.xlane.xlu0 %1919 }
0x25df   : > { %2076 = vst [vmem:[%s3220_s23 + $0x18] sm:$0xff] %v2060_v19 }
0x25e5   : > { %v3242_v36 = vpop.xlane.xlu0 %1925 }
0x25f9   : > { %v1737_v58 = vpop.permute.xlu1 %1736 }
0x25fa   : > { %1740 = vst.msk [vmem:[#allocation3 + $0x78] sm:$0xff] %vm499_vm0, %v1737_v58  ;;  %v1741_v24 = vsel %vm499_vm0, %v1737_v58, %v3143_v11 }
0x25fb   : > { %1743 = vst.msk [vmem:[%s470_s24] sm:$0xff] %vm1742_vm3, %v1741_v24 }
0x2601   : > { %v1759_v26 = vld [vmem:[#allocation3 + $0x78] sm:$0xff] }
0x2602   : > { %2301 = vmatmul.msk.f32.gmra.mxu3 %vm499_vm0, %v1759_v26 }
0x2624   : > { %v3240_v34 = vpop.xlane.xlu1 %1901 }
0x262c   : > { %v3244_v37 = vpop.xlane.xlu1 %1909 }
0x262d   : > { %v1935_v38 = vsub.f32 %v3194_v48, %v3244_v37 }
0x262e   : > { %v1980_v11 = vpop.xlane.xlu0 %1979 }
0x262f   : > { %v1957_v18 = vmul.f32 1.442695, %v1935_v38  ;;  %2510 = vlog2.f32 %v1980_v11  ;;  %v1943_v38 = vsub.f32 %v3172_v23, %v3242_v36 }
0x2631   : > { %2512 = vpow2.f32 %v1957_v18  ;;  %v1973_v11 = vmul.f32 1.442695, %v1943_v38 }
0x2634   : > { %v3248_v20 = vpop.xlane.xlu1 %1915 }
0x2635   : > { %v2511_v39 = vpop.eup %2510  ;;  %v1938_v25 = vsub.f32 %v3203_v55, %v3248_v20 }
0x2636   : > { %v2012_v40 = vmul.f32 0.6931472, %v2511_v39  ;;  %v1986_v42 = vpop.xlane.xlu0 %1985 }
0x2637   : > { %v2513_v31 = vpop.eup %2512  ;;  %v1963_v33 = vmul.f32 1.442695, %v1938_v25  ;;  %2514 = vlog2.f32 %v1986_v42 }
0x2638   : > { %v2042_v22 = vadd.f32 %v2012_v40, %v3185_v45  ;;  %1989 = vadd.xlane.f32.xlu2 %v2513_v31 }
0x2639   : > { %2516 = vpow2.f32 %v1963_v33 }
0x263a   : > { %v2058_v47 = vsub.f32 %v3148_v14, %v2042_v22 }
0x263c   : > { %2074 = vst [vmem:[%s3220_s23 + $0x8] sm:$0xff] %v2058_v47  ;;  %v3255_v50 = vpop.xlane.xlu1 %1921 }
0x263d   : > { %v2515_v51 = vpop.eup %2514  ;;  %v1941_v52 = vsub.f32 %v3212_v61, %v3255_v50 }
0x263e   : > { %v2018_v53 = vmul.f32 0.6931472, %v2515_v51  ;;  %v1992_v56 = vpop.xlane.xlu0 %1991 }
0x263f   : > { %v2517_v59 = vpop.eup %2516  ;;  %v1969_v60 = vmul.f32 1.442695, %v1941_v52  ;;  %2518 = vlog2.f32 %v1992_v56 }
0x2640   : > { %v2045_v45 = vadd.f32 %v2018_v53, %v3177_v41  ;;  %1995 = vadd.xlane.f32.xlu2 %v2517_v59 }
0x2641   : > { %2520 = vpow2.f32 %v1969_v60 }
0x2642   : > { %v2061_v54 = vsub.f32 %v3124_v1, %v2045_v45 }
0x2644   : > { %2077 = vst [vmem:[%s3220_s23 + $0x20] sm:$0xff] %v2061_v54 }
0x2645   : > { %v2519_v14 = vpop.eup %2518 }
0x2646   : > { %v2024_v63 = vmul.f32 0.6931472, %v2519_v14  ;;  %v1998_v0 = vpop.xlane.xlu0 %1997 }
0x2647   : > { %v2521_v2 = vpop.eup %2520  ;;  %2522 = vlog2.f32 %v1998_v0 }
0x2648   : > { %v2048_v3 = vadd.f32 %v2024_v63, %v3181_v43  ;;  %2001 = vadd.xlane.f32.xlu2 %v2521_v2 }
0x264a   : > { %v2064_v30 = vsub.f32 %v3130_v4, %v2048_v3  ;;  %v1931_v4 = vsub.f32 %v3183_v44, %v3240_v34 }
0x264c   : > { %2080 = vst [vmem:[%s3220_s23 + $0x38] sm:$0xff] %v2064_v30  ;;  %v1949_v15 = vmul.f32 1.442695, %v1931_v4 }
0x264d   : > { %v2523_v5 = vpop.eup %2522 }
0x264e   : > { %v2030_v41 = vmul.f32 0.6931472, %v2523_v5  ;;  %v2004_v6 = vpop.xlane.xlu0 %2003 }
0x264f   : > { %2524 = vlog2.f32 %v2004_v6 }
0x2650   : > { %v2051_v1 = vadd.f32 %v2030_v41, %v3196_v49  ;;  %2526 = vpow2.f32 %v1949_v15 }
0x2652   : > { %v2067_v7 = vsub.f32 %v3134_v35, %v2051_v1  ;;  %v1934_v35 = vsub.f32 %v3152_v16, %v3234_v27 }
0x2654   : > { %2083 = vst [vmem:[%s3220_s23 + $0x50] sm:$0xff] %v2067_v7  ;;  %v1955_v49 = vmul.f32 1.442695, %v1934_v35 }
0x2655   : > { %v2525_v9 = vpop.eup %2524 }
0x2656   : > { %v2036_v10 = vmul.f32 0.6931472, %v2525_v9  ;;  %2528 = vpow2.f32 %v1955_v49 }
0x2658   : > { %v2054_v32 = vadd.f32 %v2036_v10, %v3205_v57  ;;  %v2527_v57 = vpop.eup %2526 }
0x265a   : > { %v2070_v12 = vsub.f32 %v3138_v8, %v2054_v32  ;;  %v1937_v8 = vsub.f32 %v3156_v21, %v3236_v28 }
0x265c   : > { %2086 = vst [vmem:[%s3220_s23 + $0x68] sm:$0xff] %v2070_v12  ;;  %v1961_v19 = vmul.f32 1.442695, %v1937_v8  ;;  %v2529_v58 = vpop.eup %2528 }
0x265e   : > { %2530 = vpow2.f32 %v1961_v19 }
0x2664   : > { %v2531_v26 = vpop.eup %2530 }
0x2685   : > { %v1878_v43 = vpop.f32.mrf.mxu3 }
0x2686   : > { %v1879_v13 = vadd.f32 %v3111_v46, %v1878_v43  ;;  %v1940_v46 = vsub.f32 %v3164_v29, %v3238_v62 }
0x2688   : > { %v3274_v17 = vmax.f32 %v1879_v13, 0.0  ;;  %v1967_v24 = vmul.f32 1.442695, %v1940_v46 }
0x268a   : > { %1927 = vmax.xlane.f32.xlu1 %v3274_v17  ;;  %2532 = vpow2.f32 %v1967_v24 }
0x268b   : > { %2534 = vpow2.f32 %v1973_v11 }
0x2690   : > { %v2533_v18 = vpop.eup %2532 }
0x2691   : > { %v2535_v25 = vpop.eup %2534 }
0x2692   : > { %1981 = vadd.xlane.f32.xlu1 %v2527_v57 }
0x269a   : > { %1987 = vadd.xlane.f32.xlu1 %v2529_v58 }
0x26a2   : > { %1993 = vadd.xlane.f32.xlu1 %v2531_v26 }
0x26aa   : > { %1999 = vadd.xlane.f32.xlu1 %v2533_v18 }
0x26ab   : > { %v1990_v39 = vpop.xlane.xlu2 %1989 }
0x26ac   : > { %2536 = vlog2.f32 %v1990_v39 }
0x26b2   : > { %v2537_v40 = vpop.eup %2536  ;;  %2005 = vadd.xlane.f32.xlu1 %v2535_v25 }
0x26b3   : > { %v2022_v42 = vmul.f32 0.6931472, %v2537_v40  ;;  %v1996_v31 = vpop.xlane.xlu2 %1995 }
0x26b4   : > { %2538 = vlog2.f32 %v1996_v31 }
0x26b5   : > { %v2047_v33 = vadd.f32 %v2022_v42, %v3244_v37 }
0x26b7   : > { %v2063_v22 = vsub.f32 %v3194_v48, %v2047_v33 }
0x26b9   : > { %2079 = vst [vmem:[%s3220_s23 + $0x30] sm:$0xff] %v2063_v22 }
0x26ba   : > { %v2539_v47 = vpop.eup %2538 }
0x26bb   : > { %v2028_v51 = vmul.f32 0.6931472, %v2539_v47  ;;  %v2002_v52 = vpop.xlane.xlu2 %2001 }
0x26bc   : > { %2540 = vlog2.f32 %v2002_v52 }
0x26bd   : > { %v2050_v53 = vadd.f32 %v2028_v51, %v3248_v20 }
0x26bf   : > { %v2066_v56 = vsub.f32 %v3203_v55, %v2050_v53 }
0x26c1   : > { %2082 = vst [vmem:[%s3220_s23 + $0x48] sm:$0xff] %v2066_v56 }
0x26c2   : > { %v2541_v59 = vpop.eup %2540 }
0x26c3   : > { %v2034_v60 = vmul.f32 0.6931472, %v2541_v59 }
0x26c5   : > { %v2053_v45 = vadd.f32 %v2034_v60, %v3255_v50 }
0x26c7   : > { %v2069_v54 = vsub.f32 %v3212_v61, %v2053_v45 }
0x26c9   : > { %2085 = vst [vmem:[%s3220_s23 + $0x60] sm:$0xff] %v2069_v54 }
0x26fd   : > { %v1928_v37 = vpop.xlane.xlu1 %1927 }
0x26fe   : > { %v1944_v48 = vsub.f32 %v3274_v17, %v1928_v37 }
0x2700   : > { %v1975_v14 = vmul.f32 1.442695, %v1944_v48 }
0x2702   : > { %2542 = vpow2.f32 %v1975_v14 }
0x2705   : > { %v1982_v63 = vpop.xlane.xlu1 %1981 }
0x2706   : > { %2544 = vlog2.f32 %v1982_v63 }
0x2708   : > { %v2543_v20 = vpop.eup %2542 }
0x2709   : > { %2007 = vadd.xlane.f32.xlu2 %v2543_v20 }
0x270c   : > { %v2545_v55 = vpop.eup %2544 }
0x270d   : > { %v2014_v0 = vmul.f32 0.6931472, %v2545_v55  ;;  %v1988_v2 = vpop.xlane.xlu1 %1987 }
0x270e   : > { %2546 = vlog2.f32 %v1988_v2 }
0x270f   : > { %v2043_v50 = vadd.f32 %v2014_v0, %v3240_v34 }
0x2711   : > { %v2059_v61 = vsub.f32 %v3183_v44, %v2043_v50 }
0x2713   : > { %2075 = vst [vmem:[%s3220_s23 + $0x10] sm:$0xff] %v2059_v61 }
0x2714   : > { %v2547_v3 = vpop.eup %2546 }
0x2715   : > { %v2020_v30 = vmul.f32 0.6931472, %v2547_v3  ;;  %v1994_v5 = vpop.xlane.xlu1 %1993 }
0x2716   : > { %2548 = vlog2.f32 %v1994_v5 }
0x2717   : > { %v2046_v41 = vadd.f32 %v2020_v30, %v3234_v27 }
0x2719   : > { %v2062_v6 = vsub.f32 %v3152_v16, %v2046_v41 }
0x271b   : > { %2078 = vst [vmem:[%s3220_s23 + $0x28] sm:$0xff] %v2062_v6 }
0x271c   : > { %v2549_v1 = vpop.eup %2548 }
0x271d   : > { %v2026_v7 = vmul.f32 0.6931472, %v2549_v1  ;;  %v2000_v9 = vpop.xlane.xlu1 %1999 }
0x271e   : > { %2550 = vlog2.f32 %v2000_v9 }
0x271f   : > { %v2049_v34 = vadd.f32 %v2026_v7, %v3236_v28 }
0x2721   : > { %v2065_v44 = vsub.f32 %v3156_v21, %v2049_v34 }
0x2723   : > { %2081 = vst [vmem:[%s3220_s23 + $0x40] sm:$0xff] %v2065_v44 }
0x2724   : > { %v2551_v10 = vpop.eup %2550 }
0x2725   : > { %v2032_v32 = vmul.f32 0.6931472, %v2551_v10  ;;  %v2006_v12 = vpop.xlane.xlu1 %2005 }
0x2726   : > { %2552 = vlog2.f32 %v2006_v12 }
0x2727   : > { %v2052_v27 = vadd.f32 %v2032_v32, %v3238_v62 }
0x2729   : > { %v2068_v16 = vsub.f32 %v3164_v29, %v2052_v27 }
0x272b   : > { %2084 = vst [vmem:[%s3220_s23 + $0x58] sm:$0xff] %v2068_v16 }
0x272c   : > { %v2553_v4 = vpop.eup %2552 }
0x272d   : > { %v2038_v43 = vmul.f32 0.6931472, %v2553_v4 }
0x272f   : > { %v2055_v13 = vadd.f32 %v2038_v43, %v3242_v36 }
0x2731   : > { %v2071_v21 = vsub.f32 %v3172_v23, %v2055_v13 }
0x2733   : > { %2087 = vst [vmem:[%s3220_s23 + $0x70] sm:$0xff] %v2071_v21 }
0x277c   : > { %v2008_v28 = vpop.xlane.xlu2 %2007 }
0x277d   : > { %2554 = vlog2.f32 %v2008_v28 }
0x2783   : > { %v2555_v62 = vpop.eup %2554 }
0x2784   : > { %v2040_v29 = vmul.f32 0.6931472, %v2555_v62 }
0x2786   : > { %v2056_v15 = vadd.f32 %v2040_v29, %v1928_v37 }
0x2788   : > { %v2072_v36 = vsub.f32 %v3274_v17, %v2056_v15 }
0x278a   : > { %2088 = vst [vmem:[%s3220_s23 + $0x78] sm:$0xff] %v2072_v36 }
0x278b   : > { %2584 = shalt.err (!%p2581_p7)
}
0x278c   : > { %s2623_s23 = smov 128   ;;  %s2624_s27 = smov 256  }
0x278d   : > { %s2625_s17 = smov 8  }
0x278e   : > { %2318 = dma.vmem_to_hbm [thread:$0]  (%p2715_p6), %s2106_s29, 2048, %s2108_s16, %s2090_s14, %s2623_s23, %s2624_s27, %s2625_s17  }
0x278f PF: > { %s2125_s22 = sand.u32 1, %s2607_s30   ;;  %p2321_p10 = pnand %p2229_p9, %p2719_p8 }
0x2790   : > { %s2126_s28 = scalar_lea.sflag [#allocation6], %s2125_s22 }
0x2791   : > { %p2322_p11 = pneg %p2321_p10 }
0x2793   : > { %2602 = dma.done.wait (%p2322_p11), %s2126_s28, 2048  }
0x2794   : > { %2604 = vsyncadd (%p2322_p11), %s2126_s28, 4294965248  ;;  %p20_p12 = scmp.ge.s32.totalorder %s2701_s15, 4   ;;  %s3361_s30 = smov %s2611_s10 }
0x2795   : > { %s3362_s10 = smov %s2615_s11  ;;  %s3363_s11 = smov %s2713_s18 }
0x2796   : > { %s3364_s12 = smov %s2701_s15  ;;  %22 = sbr.rel (!%p20_p12) target bundleno = 3 (0x3), region = 178 }
0x279b   :  { %2139 = vsyncpa [#allocation6], 1 }
0x279c   :  { %2141 = vsyncpa [#allocation6 + $0x1], 1 }

</bundles_post_ra>
